<compile_context>
chip_gen: v5e
topology: v5e:2x2
jax: 0.10.0
libtpu: 0.0.40
codegen_flags: <defaults>
</compile_context>

<pallas_src>
import jax
import jax.numpy as jnp
from jax.experimental import pallas as pl
from jax.experimental.pallas import tpu as pltpu  # noqa: F401  (TPU backend; kept for tuning hooks)


def make_lstm2_kernel(B, S, H):
    """Build the single-invocation 2-layer LSTM kernel for fixed B, S, H."""

    def lstm2_kernel(xsb_ref, wih0_ref, whh0_ref, w1_ref, b0_ref, b1_ref, out_ref):
        """Refs (whole arrays, resident in VMEM; gate columns in [i,f,o,g] order):
          xsb_ref : (S*B, Din)   time-major flattened input (row t*B+b == x[b, t])
          wih0_ref: (Din, 4H)    layer-0 input weights  W_ih0^T
          whh0_ref: (H,   4H)    layer-0 recurrent weights W_hh0^T
          w1_ref  : (2H,  4H)    layer-1 stacked [W_ih1; W_hh1]^T
          b0_ref  : (1,   4H)    layer-0 combined bias (b_ih + b_hh)
          b1_ref  : (1,   4H)    layer-1 combined bias
          out_ref : (B, S*H)     lane-dense output slab (h1 for every step)
        """
        # Hoist all weight/bias loads and broadcasts out of the unrolled loop.
        whh0 = whh0_ref[...]                                    # (H, 4H)
        w1 = w1_ref[...]                                        # (2H, 4H)
        b1 = jnp.broadcast_to(b1_ref[...], (B, 4 * H))          # (B, 4H)

        # Hoisted layer-0 input projection: one batched MXU op outside the
        # recurrence, bias folded in.  Row block t*B:(t+1)*B is step t.
        xproj = (
            jnp.dot(xsb_ref[...], wih0_ref[...],
                    preferred_element_type=jnp.float32)
            + jnp.broadcast_to(b0_ref[...], (S * B, 4 * H))
        )                                                       # (S*B, 4H)

        def activations(gates):
            # Gate columns are [i, f, o, g]:
            #  * one EUP tanh covers i/f/o via sigmoid(x) = 0.5*tanh(0.5*x)+0.5
            #  * one EUP tanh covers g
            ifo = 0.5 * jnp.tanh(0.5 * gates[:, 0:3 * H]) + 0.5
            i = ifo[:, 0 * H:1 * H]
            f = ifo[:, 1 * H:2 * H]
            o = ifo[:, 2 * H:3 * H]
            g = jnp.tanh(gates[:, 3 * H:4 * H])
            return i, f, o, g

        # State carried in vregs across the fully-unrolled loop.
        h0 = jnp.zeros((B, H), jnp.float32)
        c0 = jnp.zeros((B, H), jnp.float32)
        h1 = jnp.zeros((B, H), jnp.float32)
        c1 = jnp.zeros((B, H), jnp.float32)

        outs = []
        for t in range(S):                      # static unroll (S is small)
            # ---- layer 0: only the K=H recurrent matmul is on the serial chain
            g0 = xproj[t * B:(t + 1) * B, :] + jnp.dot(
                h0, whh0, preferred_element_type=jnp.float32)
            i0, f0, o0, gg0 = activations(g0)
            c0 = f0 * c0 + i0 * gg0
            h0 = o0 * jnp.tanh(c0)

            # ---- layer 1: one fused [h0, h1_prev] @ [W_ih1; W_hh1] dispatch
            z1 = jnp.concatenate([h0, h1], axis=1)              # (B, 2H)
            g1 = jnp.dot(z1, w1, preferred_element_type=jnp.float32) + b1
            i1, f1, o1, gg1 = activations(g1)
            c1 = f1 * c1 + i1 * gg1
            h1 = o1 * jnp.tanh(c1)

            outs.append(h1)

        # Single lane-dense, unmasked store: (B, S*H) with S*H = 128 here.
        out_ref[...] = jnp.concatenate(outs, axis=1)

    return lstm2_kernel


def _permute_gates(a, H):
    """PyTorch gate-column order [i, f, g, o] -> kernel order [i, f, o, g]."""
    i = a[..., 0 * H:1 * H]
    f = a[..., 1 * H:2 * H]
    g = a[..., 2 * H:3 * H]
    o = a[..., 3 * H:4 * H]
    return jnp.concatenate([i, f, o, g], axis=-1)


def prepare_kernel_params(p):
    """One-time conversion of PyTorch-layout params into the kernel layout:
    gate columns permuted to [i,f,o,g]; layer-1 weights stacked [W_ih1; W_hh1]."""
    H = p["whh0"].shape[0]
    return {
        "wih0": _permute_gates(p["wih0"], H),                                # (Din, 4H)
        "whh0": _permute_gates(p["whh0"], H),                                # (H, 4H)
        "w1": _permute_gates(jnp.concatenate([p["wih1"], p["whh1"]], 0), H),  # (2H, 4H)
        "b0": _permute_gates(p["b0"], H),                                    # (1, 4H)
        "b1": _permute_gates(p["b1"], H),                                    # (1, 4H)
    }


def decoder_forward(x, kp):
    """x: (B, S, Din) batch_first float32; kp: prepared kernel params.
    Returns (B, S, H)."""
    B, S, Din = x.shape
    H = kp["whh0"].shape[0]

    # Layout plumbing only (not compute hoisting): time-major flatten so the
    # kernel's per-step read of the hoisted input projection is a sublane slice.
    x_sb = x.transpose(1, 0, 2).reshape(S * B, Din)

    out_slab = pl.pallas_call(
        make_lstm2_kernel(B, S, H),
        out_shape=jax.ShapeDtypeStruct((B, S * H), jnp.float32),
        # No grid / BlockSpecs: single invocation, everything VMEM-resident.
        # Total footprint ~25 KB -- far under the scoped VMEM limit on
        # v5e/v6e/v7x, so no vmem_limit_bytes tuning needed.
    )(x_sb, kp["wih0"], kp["whh0"], kp["w1"], kp["b0"], kp["b1"])

    return out_slab.reshape(B, S, H)


def init_params(key, input_size_decoder, output_size):
    """Deterministic synthetic LSTM weights in PyTorch gate order [i,f,g,o].

    PyTorch: weight_ih_l* (4H, Din|H), weight_hh_l* (4H, H), bias_* (4H,)
    Here (already transposed for right-multiplication):
      wih{l}: (Din_l, 4H),  whh{l}: (H, 4H),  b{l} = b_ih + b_hh : (1, 4H)
    """
    Din, H = input_size_decoder, output_size
    ks = jax.random.split(key, 8)
    s0 = 1.0 / jnp.sqrt(H)

    def u(k, shape):
        return jax.random.uniform(k, shape, jnp.float32, -s0, s0)

    return {
        "wih0": u(ks[0], (Din, 4 * H)),
        "whh0": u(ks[1], (H, 4 * H)),
        "b0": u(ks[2], (1, 4 * H)) + u(ks[3], (1, 4 * H)),
        "wih1": u(ks[4], (H, 4 * H)),
        "whh1": u(ks[5], (H, 4 * H)),
        "b1": u(ks[6], (1, 4 * H)) + u(ks[7], (1, 4 * H)),
    }


def decoder_reference(x, p):
    """Pure-JAX reference of the 2-layer batch_first LSTM with PyTorch gate
    order, UNfused matmuls and jax.nn.sigmoid -- independently checks both the
    gate-column permutation and the fused/hoisted kernel math."""
    B, S, Din = x.shape
    H = p["whh0"].shape[0]

    def cell(x_in, h_prev, c_prev, wih, whh, b):
        gates = x_in @ wih + h_prev @ whh + b
        i = jax.nn.sigmoid(gates[:, 0 * H:1 * H])
        f = jax.nn.sigmoid(gates[:, 1 * H:2 * H])
        g = jnp.tanh(gates[:, 2 * H:3 * H])
        o = jax.nn.sigmoid(gates[:, 3 * H:4 * H])
        c_new = f * c_prev + i * g
        return o * jnp.tanh(c_new), c_new

    h0 = jnp.zeros((B, H), jnp.float32)
    c0 = jnp.zeros((B, H), jnp.float32)
    h1 = jnp.zeros((B, H), jnp.float32)
    c1 = jnp.zeros((B, H), jnp.float32)
    outs = []
    for t in range(S):
        h0, c0 = cell(x[:, t, :], h0, c0, p["wih0"], p["whh0"], p["b0"])
        h1, c1 = cell(h0, h1, c1, p["wih1"], p["whh1"], p["b1"])
        outs.append(h1)
    return jnp.stack(outs, axis=1)  # (B, S, H)


if __name__ == "__main__":
    # params.hidden_size = 32 -> decoder LSTM input size
    # params.input_size  = 16 -> decoder LSTM hidden size (module output size)
    # num_layers = 2 (default)
    B, S, Din, H = 2, 8, 32, 16

    key = jax.random.PRNGKey(0)
    kx, kparam = jax.random.split(key)
    x = jax.random.normal(kx, (B, S, Din), jnp.float32)
    params = init_params(kparam, Din, H)
    kernel_params = prepare_kernel_params(params)   # one-time layout conversion

    out = jax.jit(decoder_forward)(x, kernel_params)
    out = jax.block_until_ready(out)

    ref = decoder_reference(x, params)
    assert out.shape == (B, S, H), out.shape
    max_err = float(jnp.max(jnp.abs(out - ref)))
    assert jnp.allclose(out, ref, atol=2e-5, rtol=2e-5), max_err

    print("KERNEL_OK")
</pallas_src>

<mosaic_0001>
module attributes {stable_mosaic.version = 11 : i64} {
  func.func @lstm2_kernel(%arg0: memref<16x32xf32, #tpu.memory_space<vmem>>, %arg1: memref<32x64xf32, #tpu.memory_space<vmem>>, %arg2: memref<16x64xf32, #tpu.memory_space<vmem>>, %arg3: memref<32x64xf32, #tpu.memory_space<vmem>>, %arg4: memref<1x64xf32, #tpu.memory_space<vmem>>, %arg5: memref<1x64xf32, #tpu.memory_space<vmem>>, %arg6: memref<2x128xf32, #tpu.memory_space<vmem>>) attributes {dimension_semantics = [], scalar_prefetch = 0 : i64, scratch_operands = 0 : i64, tpu.core_type = #tpu.core_type<tc>} {
    %c0 = arith.constant 0 : index
    %c0_0 = arith.constant 0 : index
    %0 = vector.load %arg2[%c0, %c0_0] : memref<16x64xf32, #tpu.memory_space<vmem>>, vector<16x64xf32>
    %c0_1 = arith.constant 0 : index
    %c0_2 = arith.constant 0 : index
    %1 = vector.load %arg3[%c0_1, %c0_2] : memref<32x64xf32, #tpu.memory_space<vmem>>, vector<32x64xf32>
    %c0_3 = arith.constant 0 : index
    %c0_4 = arith.constant 0 : index
    %2 = vector.load %arg5[%c0_3, %c0_4] : memref<1x64xf32, #tpu.memory_space<vmem>>, vector<1x64xf32>
    %3 = vector.shape_cast %2 : vector<1x64xf32> to vector<1x64xf32>
    %4 = vector.broadcast %3 : vector<1x64xf32> to vector<2x64xf32>
    %c0_5 = arith.constant 0 : index
    %c0_6 = arith.constant 0 : index
    %5 = vector.load %arg0[%c0_5, %c0_6] : memref<16x32xf32, #tpu.memory_space<vmem>>, vector<16x32xf32>
    %c0_7 = arith.constant 0 : index
    %c0_8 = arith.constant 0 : index
    %6 = vector.load %arg1[%c0_7, %c0_8] : memref<32x64xf32, #tpu.memory_space<vmem>>, vector<32x64xf32>
    %cst = arith.constant dense<0.000000e+00> : vector<16x64xf32>
    %7 = tpu.matmul %5, %6, %cst {dimension_numbers = #tpu.dot_dimension_numbers<[1], [0], [0], [1], [0, 0, 1, 1], [], []>} : vector<16x32xf32>, vector<32x64xf32>, vector<16x64xf32> -> vector<16x64xf32>
    %c0_9 = arith.constant 0 : index
    %c0_10 = arith.constant 0 : index
    %8 = vector.load %arg4[%c0_9, %c0_10] : memref<1x64xf32, #tpu.memory_space<vmem>>, vector<1x64xf32>
    %9 = vector.shape_cast %8 : vector<1x64xf32> to vector<1x64xf32>
    %10 = vector.broadcast %9 : vector<1x64xf32> to vector<16x64xf32>
    %11 = arith.addf %7, %10 : vector<16x64xf32>
    %cst_11 = arith.constant 0.000000e+00 : f32
    %12 = vector.broadcast %cst_11 : f32 to vector<2x16xf32>
    %cst_12 = arith.constant 0.000000e+00 : f32
    %13 = vector.broadcast %cst_12 : f32 to vector<2x16xf32>
    %cst_13 = arith.constant 0.000000e+00 : f32
    %14 = vector.broadcast %cst_13 : f32 to vector<2x16xf32>
    %cst_14 = arith.constant 0.000000e+00 : f32
    %15 = vector.broadcast %cst_14 : f32 to vector<2x16xf32>
    %16 = vector.extract_strided_slice %11 {offsets = [0, 0], sizes = [2, 64], strides = [1, 1]} : vector<16x64xf32> to vector<2x64xf32>
    %cst_15 = arith.constant dense<0.000000e+00> : vector<2x64xf32>
    %17 = tpu.matmul %12, %0, %cst_15 {dimension_numbers = #tpu.dot_dimension_numbers<[1], [0], [0], [1], [0, 0, 1, 1], [], []>} : vector<2x16xf32>, vector<16x64xf32>, vector<2x64xf32> -> vector<2x64xf32>
    %18 = arith.addf %16, %17 : vector<2x64xf32>
    %19 = vector.extract_strided_slice %18 {offsets = [0, 0], sizes = [2, 48], strides = [1, 1]} : vector<2x64xf32> to vector<2x48xf32>
    %cst_16 = arith.constant 5.000000e-01 : f32
    %20 = vector.broadcast %cst_16 : f32 to vector<2x48xf32>
    %21 = arith.mulf %20, %19 : vector<2x48xf32>
    %22 = math.tanh %21 : vector<2x48xf32>
    %cst_17 = arith.constant 5.000000e-01 : f32
    %23 = vector.broadcast %cst_17 : f32 to vector<2x48xf32>
    %24 = arith.mulf %23, %22 : vector<2x48xf32>
    %cst_18 = arith.constant 5.000000e-01 : f32
    %25 = vector.broadcast %cst_18 : f32 to vector<2x48xf32>
    %26 = arith.addf %24, %25 : vector<2x48xf32>
    %27 = vector.extract_strided_slice %26 {offsets = [0, 0], sizes = [2, 16], strides = [1, 1]} : vector<2x48xf32> to vector<2x16xf32>
    %28 = vector.extract_strided_slice %26 {offsets = [0, 16], sizes = [2, 16], strides = [1, 1]} : vector<2x48xf32> to vector<2x16xf32>
    %29 = vector.extract_strided_slice %26 {offsets = [0, 32], sizes = [2, 16], strides = [1, 1]} : vector<2x48xf32> to vector<2x16xf32>
    %30 = vector.extract_strided_slice %18 {offsets = [0, 48], sizes = [2, 16], strides = [1, 1]} : vector<2x64xf32> to vector<2x16xf32>
    %31 = math.tanh %30 : vector<2x16xf32>
    %32 = arith.mulf %28, %13 : vector<2x16xf32>
    %33 = arith.mulf %27, %31 : vector<2x16xf32>
    %34 = arith.addf %32, %33 : vector<2x16xf32>
    %35 = math.tanh %34 : vector<2x16xf32>
    %36 = arith.mulf %29, %35 : vector<2x16xf32>
    %37 = tpu.concatenate %36, %14 in 1 : vector<2x16xf32>, vector<2x16xf32> -> vector<2x32xf32>
    %cst_19 = arith.constant dense<0.000000e+00> : vector<2x64xf32>
    %38 = tpu.matmul %37, %1, %cst_19 {dimension_numbers = #tpu.dot_dimension_numbers<[1], [0], [0], [1], [0, 0, 1, 1], [], []>} : vector<2x32xf32>, vector<32x64xf32>, vector<2x64xf32> -> vector<2x64xf32>
    %39 = arith.addf %38, %4 : vector<2x64xf32>
    %40 = vector.extract_strided_slice %39 {offsets = [0, 0], sizes = [2, 48], strides = [1, 1]} : vector<2x64xf32> to vector<2x48xf32>
    %cst_20 = arith.constant 5.000000e-01 : f32
    %41 = vector.broadcast %cst_20 : f32 to vector<2x48xf32>
    %42 = arith.mulf %41, %40 : vector<2x48xf32>
    %43 = math.tanh %42 : vector<2x48xf32>
    %cst_21 = arith.constant 5.000000e-01 : f32
    %44 = vector.broadcast %cst_21 : f32 to vector<2x48xf32>
    %45 = arith.mulf %44, %43 : vector<2x48xf32>
    %cst_22 = arith.constant 5.000000e-01 : f32
    %46 = vector.broadcast %cst_22 : f32 to vector<2x48xf32>
    %47 = arith.addf %45, %46 : vector<2x48xf32>
    %48 = vector.extract_strided_slice %47 {offsets = [0, 0], sizes = [2, 16], strides = [1, 1]} : vector<2x48xf32> to vector<2x16xf32>
    %49 = vector.extract_strided_slice %47 {offsets = [0, 16], sizes = [2, 16], strides = [1, 1]} : vector<2x48xf32> to vector<2x16xf32>
    %50 = vector.extract_strided_slice %47 {offsets = [0, 32], sizes = [2, 16], strides = [1, 1]} : vector<2x48xf32> to vector<2x16xf32>
    %51 = vector.extract_strided_slice %39 {offsets = [0, 48], sizes = [2, 16], strides = [1, 1]} : vector<2x64xf32> to vector<2x16xf32>
    %52 = math.tanh %51 : vector<2x16xf32>
    %53 = arith.mulf %49, %15 : vector<2x16xf32>
    %54 = arith.mulf %48, %52 : vector<2x16xf32>
    %55 = arith.addf %53, %54 : vector<2x16xf32>
    %56 = math.tanh %55 : vector<2x16xf32>
    %57 = arith.mulf %50, %56 : vector<2x16xf32>
    %58 = vector.extract_strided_slice %11 {offsets = [2, 0], sizes = [2, 64], strides = [1, 1]} : vector<16x64xf32> to vector<2x64xf32>
    %cst_23 = arith.constant dense<0.000000e+00> : vector<2x64xf32>
    %59 = tpu.matmul %36, %0, %cst_23 {dimension_numbers = #tpu.dot_dimension_numbers<[1], [0], [0], [1], [0, 0, 1, 1], [], []>} : vector<2x16xf32>, vector<16x64xf32>, vector<2x64xf32> -> vector<2x64xf32>
    %60 = arith.addf %58, %59 : vector<2x64xf32>
    %61 = vector.extract_strided_slice %60 {offsets = [0, 0], sizes = [2, 48], strides = [1, 1]} : vector<2x64xf32> to vector<2x48xf32>
    %cst_24 = arith.constant 5.000000e-01 : f32
    %62 = vector.broadcast %cst_24 : f32 to vector<2x48xf32>
    %63 = arith.mulf %62, %61 : vector<2x48xf32>
    %64 = math.tanh %63 : vector<2x48xf32>
    %cst_25 = arith.constant 5.000000e-01 : f32
    %65 = vector.broadcast %cst_25 : f32 to vector<2x48xf32>
    %66 = arith.mulf %65, %64 : vector<2x48xf32>
    %cst_26 = arith.constant 5.000000e-01 : f32
    %67 = vector.broadcast %cst_26 : f32 to vector<2x48xf32>
    %68 = arith.addf %66, %67 : vector<2x48xf32>
    %69 = vector.extract_strided_slice %68 {offsets = [0, 0], sizes = [2, 16], strides = [1, 1]} : vector<2x48xf32> to vector<2x16xf32>
    %70 = vector.extract_strided_slice %68 {offsets = [0, 16], sizes = [2, 16], strides = [1, 1]} : vector<2x48xf32> to vector<2x16xf32>
    %71 = vector.extract_strided_slice %68 {offsets = [0, 32], sizes = [2, 16], strides = [1, 1]} : vector<2x48xf32> to vector<2x16xf32>
    %72 = vector.extract_strided_slice %60 {offsets = [0, 48], sizes = [2, 16], strides = [1, 1]} : vector<2x64xf32> to vector<2x16xf32>
    %73 = math.tanh %72 : vector<2x16xf32>
    %74 = arith.mulf %70, %34 : vector<2x16xf32>
    %75 = arith.mulf %69, %73 : vector<2x16xf32>
    %76 = arith.addf %74, %75 : vector<2x16xf32>
    %77 = math.tanh %76 : vector<2x16xf32>
    %78 = arith.mulf %71, %77 : vector<2x16xf32>
    %79 = tpu.concatenate %78, %57 in 1 : vector<2x16xf32>, vector<2x16xf32> -> vector<2x32xf32>
    %cst_27 = arith.constant dense<0.000000e+00> : vector<2x64xf32>
    %80 = tpu.matmul %79, %1, %cst_27 {dimension_numbers = #tpu.dot_dimension_numbers<[1], [0], [0], [1], [0, 0, 1, 1], [], []>} : vector<2x32xf32>, vector<32x64xf32>, vector<2x64xf32> -> vector<2x64xf32>
    %81 = arith.addf %80, %4 : vector<2x64xf32>
    %82 = vector.extract_strided_slice %81 {offsets = [0, 0], sizes = [2, 48], strides = [1, 1]} : vector<2x64xf32> to vector<2x48xf32>
    %cst_28 = arith.constant 5.000000e-01 : f32
    %83 = vector.broadcast %cst_28 : f32 to vector<2x48xf32>
    %84 = arith.mulf %83, %82 : vector<2x48xf32>
    %85 = math.tanh %84 : vector<2x48xf32>
    %cst_29 = arith.constant 5.000000e-01 : f32
    %86 = vector.broadcast %cst_29 : f32 to vector<2x48xf32>
    %87 = arith.mulf %86, %85 : vector<2x48xf32>
    %cst_30 = arith.constant 5.000000e-01 : f32
    %88 = vector.broadcast %cst_30 : f32 to vector<2x48xf32>
    %89 = arith.addf %87, %88 : vector<2x48xf32>
    %90 = vector.extract_strided_slice %89 {offsets = [0, 0], sizes = [2, 16], strides = [1, 1]} : vector<2x48xf32> to vector<2x16xf32>
    %91 = vector.extract_strided_slice %89 {offsets = [0, 16], sizes = [2, 16], strides = [1, 1]} : vector<2x48xf32> to vector<2x16xf32>
    %92 = vector.extract_strided_slice %89 {offsets = [0, 32], sizes = [2, 16], strides = [1, 1]} : vector<2x48xf32> to vector<2x16xf32>
    %93 = vector.extract_strided_slice %81 {offsets = [0, 48], sizes = [2, 16], strides = [1, 1]} : vector<2x64xf32> to vector<2x16xf32>
    %94 = math.tanh %93 : vector<2x16xf32>
    %95 = arith.mulf %91, %55 : vector<2x16xf32>
    %96 = arith.mulf %90, %94 : vector<2x16xf32>
    %97 = arith.addf %95, %96 : vector<2x16xf32>
    %98 = math.tanh %97 : vector<2x16xf32>
    %99 = arith.mulf %92, %98 : vector<2x16xf32>
    %100 = vector.extract_strided_slice %11 {offsets = [4, 0], sizes = [2, 64], strides = [1, 1]} : vector<16x64xf32> to vector<2x64xf32>
    %cst_31 = arith.constant dense<0.000000e+00> : vector<2x64xf32>
    %101 = tpu.matmul %78, %0, %cst_31 {dimension_numbers = #tpu.dot_dimension_numbers<[1], [0], [0], [1], [0, 0, 1, 1], [], []>} : vector<2x16xf32>, vector<16x64xf32>, vector<2x64xf32> -> vector<2x64xf32>
    %102 = arith.addf %100, %101 : vector<2x64xf32>
    %103 = vector.extract_strided_slice %102 {offsets = [0, 0], sizes = [2, 48], strides = [1, 1]} : vector<2x64xf32> to vector<2x48xf32>
    %cst_32 = arith.constant 5.000000e-01 : f32
    %104 = vector.broadcast %cst_32 : f32 to vector<2x48xf32>
    %105 = arith.mulf %104, %103 : vector<2x48xf32>
    %106 = math.tanh %105 : vector<2x48xf32>
    %cst_33 = arith.constant 5.000000e-01 : f32
    %107 = vector.broadcast %cst_33 : f32 to vector<2x48xf32>
    %108 = arith.mulf %107, %106 : vector<2x48xf32>
    %cst_34 = arith.constant 5.000000e-01 : f32
    %109 = vector.broadcast %cst_34 : f32 to vector<2x48xf32>
    %110 = arith.addf %108, %109 : vector<2x48xf32>
    %111 = vector.extract_strided_slice %110 {offsets = [0, 0], sizes = [2, 16], strides = [1, 1]} : vector<2x48xf32> to vector<2x16xf32>
    %112 = vector.extract_strided_slice %110 {offsets = [0, 16], sizes = [2, 16], strides = [1, 1]} : vector<2x48xf32> to vector<2x16xf32>
    %113 = vector.extract_strided_slice %110 {offsets = [0, 32], sizes = [2, 16], strides = [1, 1]} : vector<2x48xf32> to vector<2x16xf32>
    %114 = vector.extract_strided_slice %102 {offsets = [0, 48], sizes = [2, 16], strides = [1, 1]} : vector<2x64xf32> to vector<2x16xf32>
    %115 = math.tanh %114 : vector<2x16xf32>
    %116 = arith.mulf %112, %76 : vector<2x16xf32>
    %117 = arith.mulf %111, %115 : vector<2x16xf32>
    %118 = arith.addf %116, %117 : vector<2x16xf32>
    %119 = math.tanh %118 : vector<2x16xf32>
    %120 = arith.mulf %113, %119 : vector<2x16xf32>
    %121 = tpu.concatenate %120, %99 in 1 : vector<2x16xf32>, vector<2x16xf32> -> vector<2x32xf32>
    %cst_35 = arith.constant dense<0.000000e+00> : vector<2x64xf32>
    %122 = tpu.matmul %121, %1, %cst_35 {dimension_numbers = #tpu.dot_dimension_numbers<[1], [0], [0], [1], [0, 0, 1, 1], [], []>} : vector<2x32xf32>, vector<32x64xf32>, vector<2x64xf32> -> vector<2x64xf32>
    %123 = arith.addf %122, %4 : vector<2x64xf32>
    %124 = vector.extract_strided_slice %123 {offsets = [0, 0], sizes = [2, 48], strides = [1, 1]} : vector<2x64xf32> to vector<2x48xf32>
    %cst_36 = arith.constant 5.000000e-01 : f32
    %125 = vector.broadcast %cst_36 : f32 to vector<2x48xf32>
    %126 = arith.mulf %125, %124 : vector<2x48xf32>
    %127 = math.tanh %126 : vector<2x48xf32>
    %cst_37 = arith.constant 5.000000e-01 : f32
    %128 = vector.broadcast %cst_37 : f32 to vector<2x48xf32>
    %129 = arith.mulf %128, %127 : vector<2x48xf32>
    %cst_38 = arith.constant 5.000000e-01 : f32
    %130 = vector.broadcast %cst_38 : f32 to vector<2x48xf32>
    %131 = arith.addf %129, %130 : vector<2x48xf32>
    %132 = vector.extract_strided_slice %131 {offsets = [0, 0], sizes = [2, 16], strides = [1, 1]} : vector<2x48xf32> to vector<2x16xf32>
    %133 = vector.extract_strided_slice %131 {offsets = [0, 16], sizes = [2, 16], strides = [1, 1]} : vector<2x48xf32> to vector<2x16xf32>
    %134 = vector.extract_strided_slice %131 {offsets = [0, 32], sizes = [2, 16], strides = [1, 1]} : vector<2x48xf32> to vector<2x16xf32>
    %135 = vector.extract_strided_slice %123 {offsets = [0, 48], sizes = [2, 16], strides = [1, 1]} : vector<2x64xf32> to vector<2x16xf32>
    %136 = math.tanh %135 : vector<2x16xf32>
    %137 = arith.mulf %133, %97 : vector<2x16xf32>
    %138 = arith.mulf %132, %136 : vector<2x16xf32>
    %139 = arith.addf %137, %138 : vector<2x16xf32>
    %140 = math.tanh %139 : vector<2x16xf32>
    %141 = arith.mulf %134, %140 : vector<2x16xf32>
    %142 = vector.extract_strided_slice %11 {offsets = [6, 0], sizes = [2, 64], strides = [1, 1]} : vector<16x64xf32> to vector<2x64xf32>
    %cst_39 = arith.constant dense<0.000000e+00> : vector<2x64xf32>
    %143 = tpu.matmul %120, %0, %cst_39 {dimension_numbers = #tpu.dot_dimension_numbers<[1], [0], [0], [1], [0, 0, 1, 1], [], []>} : vector<2x16xf32>, vector<16x64xf32>, vector<2x64xf32> -> vector<2x64xf32>
    %144 = arith.addf %142, %143 : vector<2x64xf32>
    %145 = vector.extract_strided_slice %144 {offsets = [0, 0], sizes = [2, 48], strides = [1, 1]} : vector<2x64xf32> to vector<2x48xf32>
    %cst_40 = arith.constant 5.000000e-01 : f32
    %146 = vector.broadcast %cst_40 : f32 to vector<2x48xf32>
    %147 = arith.mulf %146, %145 : vector<2x48xf32>
    %148 = math.tanh %147 : vector<2x48xf32>
    %cst_41 = arith.constant 5.000000e-01 : f32
    %149 = vector.broadcast %cst_41 : f32 to vector<2x48xf32>
    %150 = arith.mulf %149, %148 : vector<2x48xf32>
    %cst_42 = arith.constant 5.000000e-01 : f32
    %151 = vector.broadcast %cst_42 : f32 to vector<2x48xf32>
    %152 = arith.addf %150, %151 : vector<2x48xf32>
    %153 = vector.extract_strided_slice %152 {offsets = [0, 0], sizes = [2, 16], strides = [1, 1]} : vector<2x48xf32> to vector<2x16xf32>
    %154 = vector.extract_strided_slice %152 {offsets = [0, 16], sizes = [2, 16], strides = [1, 1]} : vector<2x48xf32> to vector<2x16xf32>
    %155 = vector.extract_strided_slice %152 {offsets = [0, 32], sizes = [2, 16], strides = [1, 1]} : vector<2x48xf32> to vector<2x16xf32>
    %156 = vector.extract_strided_slice %144 {offsets = [0, 48], sizes = [2, 16], strides = [1, 1]} : vector<2x64xf32> to vector<2x16xf32>
    %157 = math.tanh %156 : vector<2x16xf32>
    %158 = arith.mulf %154, %118 : vector<2x16xf32>
    %159 = arith.mulf %153, %157 : vector<2x16xf32>
    %160 = arith.addf %158, %159 : vector<2x16xf32>
    %161 = math.tanh %160 : vector<2x16xf32>
    %162 = arith.mulf %155, %161 : vector<2x16xf32>
    %163 = tpu.concatenate %162, %141 in 1 : vector<2x16xf32>, vector<2x16xf32> -> vector<2x32xf32>
    %cst_43 = arith.constant dense<0.000000e+00> : vector<2x64xf32>
    %164 = tpu.matmul %163, %1, %cst_43 {dimension_numbers = #tpu.dot_dimension_numbers<[1], [0], [0], [1], [0, 0, 1, 1], [], []>} : vector<2x32xf32>, vector<32x64xf32>, vector<2x64xf32> -> vector<2x64xf32>
    %165 = arith.addf %164, %4 : vector<2x64xf32>
    %166 = vector.extract_strided_slice %165 {offsets = [0, 0], sizes = [2, 48], strides = [1, 1]} : vector<2x64xf32> to vector<2x48xf32>
    %cst_44 = arith.constant 5.000000e-01 : f32
    %167 = vector.broadcast %cst_44 : f32 to vector<2x48xf32>
    %168 = arith.mulf %167, %166 : vector<2x48xf32>
    %169 = math.tanh %168 : vector<2x48xf32>
    %cst_45 = arith.constant 5.000000e-01 : f32
    %170 = vector.broadcast %cst_45 : f32 to vector<2x48xf32>
    %171 = arith.mulf %170, %169 : vector<2x48xf32>
    %cst_46 = arith.constant 5.000000e-01 : f32
    %172 = vector.broadcast %cst_46 : f32 to vector<2x48xf32>
    %173 = arith.addf %171, %172 : vector<2x48xf32>
    %174 = vector.extract_strided_slice %173 {offsets = [0, 0], sizes = [2, 16], strides = [1, 1]} : vector<2x48xf32> to vector<2x16xf32>
    %175 = vector.extract_strided_slice %173 {offsets = [0, 16], sizes = [2, 16], strides = [1, 1]} : vector<2x48xf32> to vector<2x16xf32>
    %176 = vector.extract_strided_slice %173 {offsets = [0, 32], sizes = [2, 16], strides = [1, 1]} : vector<2x48xf32> to vector<2x16xf32>
    %177 = vector.extract_strided_slice %165 {offsets = [0, 48], sizes = [2, 16], strides = [1, 1]} : vector<2x64xf32> to vector<2x16xf32>
    %178 = math.tanh %177 : vector<2x16xf32>
    %179 = arith.mulf %175, %139 : vector<2x16xf32>
    %180 = arith.mulf %174, %178 : vector<2x16xf32>
    %181 = arith.addf %179, %180 : vector<2x16xf32>
    %182 = math.tanh %181 : vector<2x16xf32>
    %183 = arith.mulf %176, %182 : vector<2x16xf32>
    %184 = vector.extract_strided_slice %11 {offsets = [8, 0], sizes = [2, 64], strides = [1, 1]} : vector<16x64xf32> to vector<2x64xf32>
    %cst_47 = arith.constant dense<0.000000e+00> : vector<2x64xf32>
    %185 = tpu.matmul %162, %0, %cst_47 {dimension_numbers = #tpu.dot_dimension_numbers<[1], [0], [0], [1], [0, 0, 1, 1], [], []>} : vector<2x16xf32>, vector<16x64xf32>, vector<2x64xf32> -> vector<2x64xf32>
    %186 = arith.addf %184, %185 : vector<2x64xf32>
    %187 = vector.extract_strided_slice %186 {offsets = [0, 0], sizes = [2, 48], strides = [1, 1]} : vector<2x64xf32> to vector<2x48xf32>
    %cst_48 = arith.constant 5.000000e-01 : f32
    %188 = vector.broadcast %cst_48 : f32 to vector<2x48xf32>
    %189 = arith.mulf %188, %187 : vector<2x48xf32>
    %190 = math.tanh %189 : vector<2x48xf32>
    %cst_49 = arith.constant 5.000000e-01 : f32
    %191 = vector.broadcast %cst_49 : f32 to vector<2x48xf32>
    %192 = arith.mulf %191, %190 : vector<2x48xf32>
    %cst_50 = arith.constant 5.000000e-01 : f32
    %193 = vector.broadcast %cst_50 : f32 to vector<2x48xf32>
    %194 = arith.addf %192, %193 : vector<2x48xf32>
    %195 = vector.extract_strided_slice %194 {offsets = [0, 0], sizes = [2, 16], strides = [1, 1]} : vector<2x48xf32> to vector<2x16xf32>
    %196 = vector.extract_strided_slice %194 {offsets = [0, 16], sizes = [2, 16], strides = [1, 1]} : vector<2x48xf32> to vector<2x16xf32>
    %197 = vector.extract_strided_slice %194 {offsets = [0, 32], sizes = [2, 16], strides = [1, 1]} : vector<2x48xf32> to vector<2x16xf32>
    %198 = vector.extract_strided_slice %186 {offsets = [0, 48], sizes = [2, 16], strides = [1, 1]} : vector<2x64xf32> to vector<2x16xf32>
    %199 = math.tanh %198 : vector<2x16xf32>
    %200 = arith.mulf %196, %160 : vector<2x16xf32>
    %201 = arith.mulf %195, %199 : vector<2x16xf32>
    %202 = arith.addf %200, %201 : vector<2x16xf32>
    %203 = math.tanh %202 : vector<2x16xf32>
    %204 = arith.mulf %197, %203 : vector<2x16xf32>
    %205 = tpu.concatenate %204, %183 in 1 : vector<2x16xf32>, vector<2x16xf32> -> vector<2x32xf32>
    %cst_51 = arith.constant dense<0.000000e+00> : vector<2x64xf32>
    %206 = tpu.matmul %205, %1, %cst_51 {dimension_numbers = #tpu.dot_dimension_numbers<[1], [0], [0], [1], [0, 0, 1, 1], [], []>} : vector<2x32xf32>, vector<32x64xf32>, vector<2x64xf32> -> vector<2x64xf32>
    %207 = arith.addf %206, %4 : vector<2x64xf32>
    %208 = vector.extract_strided_slice %207 {offsets = [0, 0], sizes = [2, 48], strides = [1, 1]} : vector<2x64xf32> to vector<2x48xf32>
    %cst_52 = arith.constant 5.000000e-01 : f32
    %209 = vector.broadcast %cst_52 : f32 to vector<2x48xf32>
    %210 = arith.mulf %209, %208 : vector<2x48xf32>
    %211 = math.tanh %210 : vector<2x48xf32>
    %cst_53 = arith.constant 5.000000e-01 : f32
    %212 = vector.broadcast %cst_53 : f32 to vector<2x48xf32>
    %213 = arith.mulf %212, %211 : vector<2x48xf32>
    %cst_54 = arith.constant 5.000000e-01 : f32
    %214 = vector.broadcast %cst_54 : f32 to vector<2x48xf32>
    %215 = arith.addf %213, %214 : vector<2x48xf32>
    %216 = vector.extract_strided_slice %215 {offsets = [0, 0], sizes = [2, 16], strides = [1, 1]} : vector<2x48xf32> to vector<2x16xf32>
    %217 = vector.extract_strided_slice %215 {offsets = [0, 16], sizes = [2, 16], strides = [1, 1]} : vector<2x48xf32> to vector<2x16xf32>
    %218 = vector.extract_strided_slice %215 {offsets = [0, 32], sizes = [2, 16], strides = [1, 1]} : vector<2x48xf32> to vector<2x16xf32>
    %219 = vector.extract_strided_slice %207 {offsets = [0, 48], sizes = [2, 16], strides = [1, 1]} : vector<2x64xf32> to vector<2x16xf32>
    %220 = math.tanh %219 : vector<2x16xf32>
    %221 = arith.mulf %217, %181 : vector<2x16xf32>
    %222 = arith.mulf %216, %220 : vector<2x16xf32>
    %223 = arith.addf %221, %222 : vector<2x16xf32>
    %224 = math.tanh %223 : vector<2x16xf32>
    %225 = arith.mulf %218, %224 : vector<2x16xf32>
    %226 = vector.extract_strided_slice %11 {offsets = [10, 0], sizes = [2, 64], strides = [1, 1]} : vector<16x64xf32> to vector<2x64xf32>
    %cst_55 = arith.constant dense<0.000000e+00> : vector<2x64xf32>
    %227 = tpu.matmul %204, %0, %cst_55 {dimension_numbers = #tpu.dot_dimension_numbers<[1], [0], [0], [1], [0, 0, 1, 1], [], []>} : vector<2x16xf32>, vector<16x64xf32>, vector<2x64xf32> -> vector<2x64xf32>
    %228 = arith.addf %226, %227 : vector<2x64xf32>
    %229 = vector.extract_strided_slice %228 {offsets = [0, 0], sizes = [2, 48], strides = [1, 1]} : vector<2x64xf32> to vector<2x48xf32>
    %cst_56 = arith.constant 5.000000e-01 : f32
    %230 = vector.broadcast %cst_56 : f32 to vector<2x48xf32>
    %231 = arith.mulf %230, %229 : vector<2x48xf32>
    %232 = math.tanh %231 : vector<2x48xf32>
    %cst_57 = arith.constant 5.000000e-01 : f32
    %233 = vector.broadcast %cst_57 : f32 to vector<2x48xf32>
    %234 = arith.mulf %233, %232 : vector<2x48xf32>
    %cst_58 = arith.constant 5.000000e-01 : f32
    %235 = vector.broadcast %cst_58 : f32 to vector<2x48xf32>
    %236 = arith.addf %234, %235 : vector<2x48xf32>
    %237 = vector.extract_strided_slice %236 {offsets = [0, 0], sizes = [2, 16], strides = [1, 1]} : vector<2x48xf32> to vector<2x16xf32>
    %238 = vector.extract_strided_slice %236 {offsets = [0, 16], sizes = [2, 16], strides = [1, 1]} : vector<2x48xf32> to vector<2x16xf32>
    %239 = vector.extract_strided_slice %236 {offsets = [0, 32], sizes = [2, 16], strides = [1, 1]} : vector<2x48xf32> to vector<2x16xf32>
    %240 = vector.extract_strided_slice %228 {offsets = [0, 48], sizes = [2, 16], strides = [1, 1]} : vector<2x64xf32> to vector<2x16xf32>
    %241 = math.tanh %240 : vector<2x16xf32>
    %242 = arith.mulf %238, %202 : vector<2x16xf32>
    %243 = arith.mulf %237, %241 : vector<2x16xf32>
    %244 = arith.addf %242, %243 : vector<2x16xf32>
    %245 = math.tanh %244 : vector<2x16xf32>
    %246 = arith.mulf %239, %245 : vector<2x16xf32>
    %247 = tpu.concatenate %246, %225 in 1 : vector<2x16xf32>, vector<2x16xf32> -> vector<2x32xf32>
    %cst_59 = arith.constant dense<0.000000e+00> : vector<2x64xf32>
    %248 = tpu.matmul %247, %1, %cst_59 {dimension_numbers = #tpu.dot_dimension_numbers<[1], [0], [0], [1], [0, 0, 1, 1], [], []>} : vector<2x32xf32>, vector<32x64xf32>, vector<2x64xf32> -> vector<2x64xf32>
    %249 = arith.addf %248, %4 : vector<2x64xf32>
    %250 = vector.extract_strided_slice %249 {offsets = [0, 0], sizes = [2, 48], strides = [1, 1]} : vector<2x64xf32> to vector<2x48xf32>
    %cst_60 = arith.constant 5.000000e-01 : f32
    %251 = vector.broadcast %cst_60 : f32 to vector<2x48xf32>
    %252 = arith.mulf %251, %250 : vector<2x48xf32>
    %253 = math.tanh %252 : vector<2x48xf32>
    %cst_61 = arith.constant 5.000000e-01 : f32
    %254 = vector.broadcast %cst_61 : f32 to vector<2x48xf32>
    %255 = arith.mulf %254, %253 : vector<2x48xf32>
    %cst_62 = arith.constant 5.000000e-01 : f32
    %256 = vector.broadcast %cst_62 : f32 to vector<2x48xf32>
    %257 = arith.addf %255, %256 : vector<2x48xf32>
    %258 = vector.extract_strided_slice %257 {offsets = [0, 0], sizes = [2, 16], strides = [1, 1]} : vector<2x48xf32> to vector<2x16xf32>
    %259 = vector.extract_strided_slice %257 {offsets = [0, 16], sizes = [2, 16], strides = [1, 1]} : vector<2x48xf32> to vector<2x16xf32>
    %260 = vector.extract_strided_slice %257 {offsets = [0, 32], sizes = [2, 16], strides = [1, 1]} : vector<2x48xf32> to vector<2x16xf32>
    %261 = vector.extract_strided_slice %249 {offsets = [0, 48], sizes = [2, 16], strides = [1, 1]} : vector<2x64xf32> to vector<2x16xf32>
    %262 = math.tanh %261 : vector<2x16xf32>
    %263 = arith.mulf %259, %223 : vector<2x16xf32>
    %264 = arith.mulf %258, %262 : vector<2x16xf32>
    %265 = arith.addf %263, %264 : vector<2x16xf32>
    %266 = math.tanh %265 : vector<2x16xf32>
    %267 = arith.mulf %260, %266 : vector<2x16xf32>
    %268 = vector.extract_strided_slice %11 {offsets = [12, 0], sizes = [2, 64], strides = [1, 1]} : vector<16x64xf32> to vector<2x64xf32>
    %cst_63 = arith.constant dense<0.000000e+00> : vector<2x64xf32>
    %269 = tpu.matmul %246, %0, %cst_63 {dimension_numbers = #tpu.dot_dimension_numbers<[1], [0], [0], [1], [0, 0, 1, 1], [], []>} : vector<2x16xf32>, vector<16x64xf32>, vector<2x64xf32> -> vector<2x64xf32>
    %270 = arith.addf %268, %269 : vector<2x64xf32>
    %271 = vector.extract_strided_slice %270 {offsets = [0, 0], sizes = [2, 48], strides = [1, 1]} : vector<2x64xf32> to vector<2x48xf32>
    %cst_64 = arith.constant 5.000000e-01 : f32
    %272 = vector.broadcast %cst_64 : f32 to vector<2x48xf32>
    %273 = arith.mulf %272, %271 : vector<2x48xf32>
    %274 = math.tanh %273 : vector<2x48xf32>
    %cst_65 = arith.constant 5.000000e-01 : f32
    %275 = vector.broadcast %cst_65 : f32 to vector<2x48xf32>
    %276 = arith.mulf %275, %274 : vector<2x48xf32>
    %cst_66 = arith.constant 5.000000e-01 : f32
    %277 = vector.broadcast %cst_66 : f32 to vector<2x48xf32>
    %278 = arith.addf %276, %277 : vector<2x48xf32>
    %279 = vector.extract_strided_slice %278 {offsets = [0, 0], sizes = [2, 16], strides = [1, 1]} : vector<2x48xf32> to vector<2x16xf32>
    %280 = vector.extract_strided_slice %278 {offsets = [0, 16], sizes = [2, 16], strides = [1, 1]} : vector<2x48xf32> to vector<2x16xf32>
    %281 = vector.extract_strided_slice %278 {offsets = [0, 32], sizes = [2, 16], strides = [1, 1]} : vector<2x48xf32> to vector<2x16xf32>
    %282 = vector.extract_strided_slice %270 {offsets = [0, 48], sizes = [2, 16], strides = [1, 1]} : vector<2x64xf32> to vector<2x16xf32>
    %283 = math.tanh %282 : vector<2x16xf32>
    %284 = arith.mulf %280, %244 : vector<2x16xf32>
    %285 = arith.mulf %279, %283 : vector<2x16xf32>
    %286 = arith.addf %284, %285 : vector<2x16xf32>
    %287 = math.tanh %286 : vector<2x16xf32>
    %288 = arith.mulf %281, %287 : vector<2x16xf32>
    %289 = tpu.concatenate %288, %267 in 1 : vector<2x16xf32>, vector<2x16xf32> -> vector<2x32xf32>
    %cst_67 = arith.constant dense<0.000000e+00> : vector<2x64xf32>
    %290 = tpu.matmul %289, %1, %cst_67 {dimension_numbers = #tpu.dot_dimension_numbers<[1], [0], [0], [1], [0, 0, 1, 1], [], []>} : vector<2x32xf32>, vector<32x64xf32>, vector<2x64xf32> -> vector<2x64xf32>
    %291 = arith.addf %290, %4 : vector<2x64xf32>
    %292 = vector.extract_strided_slice %291 {offsets = [0, 0], sizes = [2, 48], strides = [1, 1]} : vector<2x64xf32> to vector<2x48xf32>
    %cst_68 = arith.constant 5.000000e-01 : f32
    %293 = vector.broadcast %cst_68 : f32 to vector<2x48xf32>
    %294 = arith.mulf %293, %292 : vector<2x48xf32>
    %295 = math.tanh %294 : vector<2x48xf32>
    %cst_69 = arith.constant 5.000000e-01 : f32
    %296 = vector.broadcast %cst_69 : f32 to vector<2x48xf32>
    %297 = arith.mulf %296, %295 : vector<2x48xf32>
    %cst_70 = arith.constant 5.000000e-01 : f32
    %298 = vector.broadcast %cst_70 : f32 to vector<2x48xf32>
    %299 = arith.addf %297, %298 : vector<2x48xf32>
    %300 = vector.extract_strided_slice %299 {offsets = [0, 0], sizes = [2, 16], strides = [1, 1]} : vector<2x48xf32> to vector<2x16xf32>
    %301 = vector.extract_strided_slice %299 {offsets = [0, 16], sizes = [2, 16], strides = [1, 1]} : vector<2x48xf32> to vector<2x16xf32>
    %302 = vector.extract_strided_slice %299 {offsets = [0, 32], sizes = [2, 16], strides = [1, 1]} : vector<2x48xf32> to vector<2x16xf32>
    %303 = vector.extract_strided_slice %291 {offsets = [0, 48], sizes = [2, 16], strides = [1, 1]} : vector<2x64xf32> to vector<2x16xf32>
    %304 = math.tanh %303 : vector<2x16xf32>
    %305 = arith.mulf %301, %265 : vector<2x16xf32>
    %306 = arith.mulf %300, %304 : vector<2x16xf32>
    %307 = arith.addf %305, %306 : vector<2x16xf32>
    %308 = math.tanh %307 : vector<2x16xf32>
    %309 = arith.mulf %302, %308 : vector<2x16xf32>
    %310 = vector.extract_strided_slice %11 {offsets = [14, 0], sizes = [2, 64], strides = [1, 1]} : vector<16x64xf32> to vector<2x64xf32>
    %cst_71 = arith.constant dense<0.000000e+00> : vector<2x64xf32>
    %311 = tpu.matmul %288, %0, %cst_71 {dimension_numbers = #tpu.dot_dimension_numbers<[1], [0], [0], [1], [0, 0, 1, 1], [], []>} : vector<2x16xf32>, vector<16x64xf32>, vector<2x64xf32> -> vector<2x64xf32>
    %312 = arith.addf %310, %311 : vector<2x64xf32>
    %313 = vector.extract_strided_slice %312 {offsets = [0, 0], sizes = [2, 48], strides = [1, 1]} : vector<2x64xf32> to vector<2x48xf32>
    %cst_72 = arith.constant 5.000000e-01 : f32
    %314 = vector.broadcast %cst_72 : f32 to vector<2x48xf32>
    %315 = arith.mulf %314, %313 : vector<2x48xf32>
    %316 = math.tanh %315 : vector<2x48xf32>
    %cst_73 = arith.constant 5.000000e-01 : f32
    %317 = vector.broadcast %cst_73 : f32 to vector<2x48xf32>
    %318 = arith.mulf %317, %316 : vector<2x48xf32>
    %cst_74 = arith.constant 5.000000e-01 : f32
    %319 = vector.broadcast %cst_74 : f32 to vector<2x48xf32>
    %320 = arith.addf %318, %319 : vector<2x48xf32>
    %321 = vector.extract_strided_slice %320 {offsets = [0, 0], sizes = [2, 16], strides = [1, 1]} : vector<2x48xf32> to vector<2x16xf32>
    %322 = vector.extract_strided_slice %320 {offsets = [0, 16], sizes = [2, 16], strides = [1, 1]} : vector<2x48xf32> to vector<2x16xf32>
    %323 = vector.extract_strided_slice %320 {offsets = [0, 32], sizes = [2, 16], strides = [1, 1]} : vector<2x48xf32> to vector<2x16xf32>
    %324 = vector.extract_strided_slice %312 {offsets = [0, 48], sizes = [2, 16], strides = [1, 1]} : vector<2x64xf32> to vector<2x16xf32>
    %325 = math.tanh %324 : vector<2x16xf32>
    %326 = arith.mulf %322, %286 : vector<2x16xf32>
    %327 = arith.mulf %321, %325 : vector<2x16xf32>
    %328 = arith.addf %326, %327 : vector<2x16xf32>
    %329 = math.tanh %328 : vector<2x16xf32>
    %330 = arith.mulf %323, %329 : vector<2x16xf32>
    %331 = tpu.concatenate %330, %309 in 1 : vector<2x16xf32>, vector<2x16xf32> -> vector<2x32xf32>
    %cst_75 = arith.constant dense<0.000000e+00> : vector<2x64xf32>
    %332 = tpu.matmul %331, %1, %cst_75 {dimension_numbers = #tpu.dot_dimension_numbers<[1], [0], [0], [1], [0, 0, 1, 1], [], []>} : vector<2x32xf32>, vector<32x64xf32>, vector<2x64xf32> -> vector<2x64xf32>
    %333 = arith.addf %332, %4 : vector<2x64xf32>
    %334 = vector.extract_strided_slice %333 {offsets = [0, 0], sizes = [2, 48], strides = [1, 1]} : vector<2x64xf32> to vector<2x48xf32>
    %cst_76 = arith.constant 5.000000e-01 : f32
    %335 = vector.broadcast %cst_76 : f32 to vector<2x48xf32>
    %336 = arith.mulf %335, %334 : vector<2x48xf32>
    %337 = math.tanh %336 : vector<2x48xf32>
    %cst_77 = arith.constant 5.000000e-01 : f32
    %338 = vector.broadcast %cst_77 : f32 to vector<2x48xf32>
    %339 = arith.mulf %338, %337 : vector<2x48xf32>
    %cst_78 = arith.constant 5.000000e-01 : f32
    %340 = vector.broadcast %cst_78 : f32 to vector<2x48xf32>
    %341 = arith.addf %339, %340 : vector<2x48xf32>
    %342 = vector.extract_strided_slice %341 {offsets = [0, 0], sizes = [2, 16], strides = [1, 1]} : vector<2x48xf32> to vector<2x16xf32>
    %343 = vector.extract_strided_slice %341 {offsets = [0, 16], sizes = [2, 16], strides = [1, 1]} : vector<2x48xf32> to vector<2x16xf32>
    %344 = vector.extract_strided_slice %341 {offsets = [0, 32], sizes = [2, 16], strides = [1, 1]} : vector<2x48xf32> to vector<2x16xf32>
    %345 = vector.extract_strided_slice %333 {offsets = [0, 48], sizes = [2, 16], strides = [1, 1]} : vector<2x64xf32> to vector<2x16xf32>
    %346 = math.tanh %345 : vector<2x16xf32>
    %347 = arith.mulf %343, %307 : vector<2x16xf32>
    %348 = arith.mulf %342, %346 : vector<2x16xf32>
    %349 = arith.addf %347, %348 : vector<2x16xf32>
    %350 = math.tanh %349 : vector<2x16xf32>
    %351 = arith.mulf %344, %350 : vector<2x16xf32>
    %352 = tpu.concatenate %57, %99, %141, %183, %225, %267, %309, %351 in 1 : vector<2x16xf32>, vector<2x16xf32>, vector<2x16xf32>, vector<2x16xf32>, vector<2x16xf32>, vector<2x16xf32>, vector<2x16xf32>, vector<2x16xf32> -> vector<2x128xf32>
    %c0_79 = arith.constant 0 : index
    %c0_80 = arith.constant 0 : index
    %353 = vector.load %arg6[%c0_79, %c0_80] : memref<2x128xf32, #tpu.memory_space<vmem>>, vector<2x128xf32>
    tpu.vector_store %arg6[%c0_79, %c0_80], %352 {strides = array<i32>} : memref<2x128xf32, #tpu.memory_space<vmem>>, vector<2x128xf32>,
    return
  }
}

</mosaic_0001>

<bundles_post_ra>
// kernel: decoder_forward.1
= control target key start
LH: loop header
LB: loop body
LE: loop exit
PB: predicated region body
PF: predicated region fallthrough
CT: control target
= control target key end

     0   :  { %11 = vsyncpa [#allocation3], 0  ;;  %s1474_s0 = inlined_call_operand.vmem [shape: f32[16,32], index: 0, kind: input, shape index: {}]   ;;  %s1475_s1 = inlined_call_operand.vmem [shape: f32[32,64], index: 1, kind: input, shape index: {}]   ;;  %s1476_s2 = inlined_call_operand.hbm [shape: f32[16,64], index: 2, kind: input, shape index: {}]   ;;  %s1477_s3 = inlined_call_operand.hbm [shape: f32[32,64], index: 3, kind: input, shape index: {}]   ;;  %s1478_s4 = inlined_call_operand.vmem [shape: f32[1,64], index: 4, kind: input, shape index: {}]   ;;  %s1479_s5 = inlined_call_operand.vmem [shape: f32[1,64], index: 5, kind: input, shape index: {}]   ;;  %s1480_s6 = inlined_call_operand.vmem [shape: f32[2,128], index: 6, kind: output, shape index: {}]  }
   0x1   :  { %s21_s23 = sshll.u32 %s1476_s2, 4  ;;  %s22_s23 = int_to_ptr.hbm [resolvable:$true] %s21_s23 }
   0x2   :  { %12 = vsyncpa [#allocation5], 0  ;;  %s1181_s24 = smov [#allocation2]   ;;  %s34_s28 = sshll.u32 %s1477_s3, 4  ;;  %s35_s28 = int_to_ptr.hbm [resolvable:$true] %s34_s28 }
   0x3   :  { %s23_s25 = sshll.u32 %s1181_s24, 4  ;;  %s1182_s29 = smov 128   ;;  %s24_s25 = int_to_ptr.vmem [resolvable:$true] %s23_s25 }
   0x4   :  { %s1183_s30 = smov 8   ;;  %s1184_s7 = smov [#allocation4]  }
   0x5   :  { %29 = dma.hbm_to_vmem [thread:$0]  %s22_s23, 256, %s24_s25, [#allocation3], %s1182_s29, %s1182_s29, %s1183_s30  }
   0x6   :  { %s36_s8 = sshll.u32 %s1184_s7, 4  ;;  %s37_s8 = int_to_ptr.vmem [resolvable:$true] %s36_s8 }
   0x7   :  { %42 = dma.hbm_to_vmem [thread:$0]  %s35_s28, 512, %s37_s8, [#allocation5], %s1182_s29, %s1182_s29, %s1183_s30  }
   0x8   :  { %1177 = dma.done.wait [#allocation3], 256  }
   0x9   :  { %1178 = vsyncadd [#allocation3], 4294967040 }
   0xa   :  { %1179 = dma.done.wait [#allocation5], 512  }
   0xb   :  { %1180 = vsyncadd [#allocation5], 4294966784  ;;  %v70_v0 = vld [vmem:[%s1475_s1 + $0x18] sm:$0xff]  ;;  %v69_v1 = vld [vmem:[%s1475_s1 + $0x10] sm:$0xff]  ;;  %vm75_vm0 = vcmask 261120   ;;  %v1185_v7 = vmov 0.0  }
   0xc   :  { %94 = vmatpush.msra.mxu0 %v70_v0  ;;  %v1240_v2 = vld [vmem:[#allocation2 + $0x8] sm:$0xff]  ;;  %v1246_v4 = vld [vmem:[#allocation2] sm:$0xff]  ;;  %s1186_s18 = smov 80   ;;  %v1285_v26 = vld [vmem:[#allocation4 + $0x8] sm:$0xff]  ;;  %s1188_s19 = smov 96   ;;  %vm105_vm1 = vcmask 130048  }
   0xd   :  { %v68_v3 = vld [vmem:[%s1475_s1 + $0x8] sm:$0xff]  ;;  %123 = vmatpush.msra.mxu1 %v1240_v2  ;;  %218 = vmatpush.msra.mxu3 %v1240_v2  ;;  %v67_v5 = vld [vmem:[%s1475_s1] sm:$0xff]  ;;  %v1292_v29 = vld [vmem:[#allocation4] sm:$0xff]  ;;  %s1191_s24 = smov 48   ;;  %s1192_s25 = smov 64   ;;  %vm985_vm2 = vcmask 392192  }
   0xe   :  { %95 = vmatpush.msra.mxu0 %v69_v1  ;;  %v65_v6 = vld [vmem:[%s1474_s0] sm:$0xff]  ;;  %v1279_v24 = vld [vmem:[#allocation4 + $0x18] sm:$0xff]  ;;  %vm987_vm3 = vcmask 523264   ;;  %vm989_vm4 = vcmask 654336   ;;  %vm991_vm5 = vcmask 785408   ;;  %vm993_vm6 = vcmask 916480  }
   0xf   :  { %124 = vmatpush.msra.mxu1 %v1246_v4  ;;  %219 = vmatpush.msra.mxu3 %v1246_v4  ;;  %v1267_v8 = vld [vmem:[%s1478_s4] ss:$0 sm:$0xff]  ;;  %s1187_s4 = smov 16  }
  0x10   :  { %96 = vmatpush.msra.mxu0 %v68_v3  ;;  %125 = vmatmul.f32.vlgmr.msra.gmra.mxu1 %v1185_v7  ;;  %v1281_v25 = vld [vmem:[#allocation4 + $0x10] sm:$0xff] }
  0x11   :  { %328 = vmatpush.msrb.mxu3 %v1240_v2  ;;  %172 = vmatpush.msra.mxu2 %v1279_v24  ;;  %v1317_v35 = vld [vmem:[%s1479_s5] ss:$0 sm:$0xff]  ;;  %s1189_s5 = smov 112  }
  0x12   :  { %97 = vmatpush.msra.mxu0 %v67_v5  ;;  %279 = vmatpush.msrb.mxu1 %v1279_v24 }
  0x13   :  { %1002 = vmatmul.msk.f32.vlgmr.msra.gmra.mxu0 %vm75_vm0, %v65_v6  ;;  %329 = vmatpush.msrb.mxu3 %v1246_v4 }
  0x14   :  { %548 = vmatpush.msrb.mxu0 %v1240_v2  ;;  %173 = vmatpush.msra.mxu2 %v1281_v25 }
  0x15   :  { %280 = vmatpush.msrb.mxu1 %v1281_v25 }
  0x16   :  { %549 = vmatpush.msrb.mxu0 %v1246_v4  ;;  %174 = vmatpush.msra.mxu2 %v1285_v26 }
  0x17   :  { %281 = vmatpush.msrb.mxu1 %v1285_v26 }
  0x18   :  { %760 = vmatpush.msra.mxu0 %v1240_v2  ;;  %175 = vmatpush.msra.mxu2 %v1292_v29 }
  0x19   :  { %282 = vmatpush.msrb.mxu1 %v1292_v29 }
  0x1a   :  { %761 = vmatpush.msra.mxu0 %v1246_v4  ;;  %389 = vmatpush.msrb.mxu2 %v1279_v24 }
  0x1b   :  { %438 = vmatpush.msra.mxu1 %v1240_v2 }
  0x1c   :  { %390 = vmatpush.msrb.mxu2 %v1281_v25 }
  0x1d   :  { %439 = vmatpush.msra.mxu1 %v1246_v4 }
  0x1e   :  { %391 = vmatpush.msrb.mxu2 %v1285_v26 }
  0x20   :  { %392 = vmatpush.msrb.mxu2 %v1292_v29 }
  0x8d   :  { %v126_v10 = vpop.f32.mrf.mxu1 }
  0x90   :  { %v99_v9 = vpop.f32.mrf.mxu0 }
  0x91   :  { %v1270_v11 = vadd.f32 %v1267_v8, %v99_v9 }
  0x93   :  { %v129_v12 = vadd.f32 %v126_v10, %v1270_v11 }
  0x95   :  { %1033 = vtanh.f32 %v129_v12  ;;  %v130_v14 = vmul.f32 0.5, %v129_v12 }
  0x97   :  { %1035 = vtanh.f32 %v130_v14 }
  0x9b   :  { %v1034_v13 = vpop.eup %1033 }
  0x9c   :  { %137 = vrot.lane.b32.xlu0 %v1034_v13, %s1186_s18 }
  0x9d   :  { %v1036_v15 = vpop.eup %1035 }
  0x9e   :  { %v132_v16 = vmul.f32 0.5, %v1036_v15 }
  0xa0   :  { %v133_v17 = vadd.f32 0.5, %v132_v16 }
  0xa2   :  { %v135_v20 = vmul.f32 0.0, %v133_v17 }
 0x10e   :  { %v138_v18 = vpop.permute.xlu0 %137 }
 0x10f   :  { %v140_v19 = vmul.f32 %v138_v18, %v133_v17 }
 0x111   :  { %142 = vrot.lane.b32.xlu0 %v140_v19, %s1187_s4 }
 0x183   :  { %v143_v21 = vpop.permute.xlu0 %142 }
 0x184   :  { %v1275_v22 = vadd.f32 %v143_v21, %v135_v20 }
 0x186   :  { %1037 = vtanh.f32 %v1275_v22  ;;  %v234_v52 = vrot.slane %v1275_v22, 6 }
 0x18c   :  { %v1038_v23 = vpop.eup %1037 }
 0x18d   :  { %148 = vrot.lane.b32.xlu1 %v1038_v23, %s1187_s4 }
 0x1ff   :  { %v149_v27 = vpop.permute.xlu1 %148 }
 0x200   :  { %v151_v28 = vmul.f32 %v149_v27, %v133_v17 }
 0x202   :  { %153 = vrot.lane.b32.xlu1 %v151_v28, %s1188_s19 }
 0x274   :  { %v154_v30 = vpop.permute.xlu1 %153 }
 0x275   :  { %1005 = vmatmul.msk.f32.vlgmr.msra.gmra.mxu3 %vm105_vm1, %v154_v30  ;;  %v156_v31 = vsel %vm105_vm1, %v154_v30, 0.0 }
 0x276   :  { %1004 = vmatmul.msk.f32.vlgmr.msra.gmra.mxu2 %vm75_vm0, %v156_v31  ;;  %499 = vmatpush.msra.mxu3 %v1279_v24 }
 0x277   :  { %604 = vmatpush.msra.mxu2 %v1279_v24 }
 0x278   :  { %500 = vmatpush.msra.mxu3 %v1281_v25 }
 0x279   :  { %605 = vmatpush.msra.mxu2 %v1281_v25 }
 0x27a   :  { %501 = vmatpush.msra.mxu3 %v1285_v26 }
 0x27b   :  { %606 = vmatpush.msra.mxu2 %v1285_v26 }
 0x27c   :  { %502 = vmatpush.msra.mxu3 %v1292_v29 }
 0x27d   :  { %607 = vmatpush.msra.mxu2 %v1292_v29 }
 0x2f8   :  { %v221_v32 = vpop.f32.mrf.mxu3 }
 0x2f9   :  { %v225_v33 = vrot.slane %v221_v32, 6  ;;  %v177_v36 = vpop.f32.mrf.mxu2 }
 0x2fa   :  { %v178_v37 = vadd.f32 %v1317_v35, %v177_v36 }
 0x2fb   :  { %v227_v34 = vadd.f32 %v225_v33, %v1270_v11 }
 0x2fc   :  { %v180_v41 = vmul.f32 0.5, %v178_v37 }
 0x2fd   :  { %1039 = vtanh.f32 %v227_v34  ;;  %v228_v40 = vmul.f32 0.5, %v227_v34 }
 0x2fe   :  { %1041 = vtanh.f32 %v178_v37 }
 0x2ff   :  { %1043 = vtanh.f32 %v228_v40 }
 0x300   :  { %1045 = vtanh.f32 %v180_v41 }
 0x303   :  { %v1040_v38 = vpop.eup %1039 }
 0x304   :  { %238 = vrot.lane.b32.xlu2 %v1040_v38, %s1186_s18  ;;  %v1042_v39 = vpop.eup %1041 }
 0x305   :  { %v1044_v42 = vpop.eup %1043 }
 0x306   :  { %v230_v43 = vmul.f32 0.5, %v1044_v42  ;;  %v1046_v45 = vpop.eup %1045 }
 0x307   :  { %v182_v48 = vmul.f32 0.5, %v1046_v45 }
 0x308   :  { %v231_v44 = vadd.f32 0.5, %v230_v43 }
 0x309   :  { %v183_v49 = vadd.f32 0.5, %v182_v48 }
 0x30a   :  { %v236_v53 = vmul.f32 %v234_v52, %v231_v44 }
 0x30b   :  { %v185_v56 = vmul.f32 0.0, %v183_v49 }
 0x30c   :  { %187 = vrot.lane.b32.xlu2 %v1042_v39, %s1186_s18 }
 0x35e   :  { %v239_v46 = vpop.permute.xlu2 %238 }
 0x35f   :  { %v241_v47 = vmul.f32 %v239_v46, %v231_v44 }
 0x361   :  { %243 = vrot.lane.b32.xlu0 %v241_v47, %s1187_s4 }
 0x366   :  { %v188_v50 = vpop.permute.xlu2 %187 }
 0x367   :  { %v190_v51 = vmul.f32 %v188_v50, %v183_v49 }
 0x369   :  { %192 = vrot.lane.b32.xlu1 %v190_v51, %s1187_s4 }
 0x3d3   :  { %v244_v54 = vpop.permute.xlu0 %243 }
 0x3d4   :  { %v246_v55 = vadd.f32 %v244_v54, %v236_v53 }
 0x3d6   :  { %1047 = vtanh.f32 %v246_v55  ;;  %v344_v36 = vrot.slane %v246_v55, 6 }
 0x3db   :  { %v193_v57 = vpop.permute.xlu1 %192 }
 0x3dc   :  { %v1048_v58 = vpop.eup %1047  ;;  %v195_v59 = vadd.f32 %v193_v57, %v185_v56 }
 0x3dd   :  { %249 = vrot.lane.b32.xlu2 %v1048_v58, %s1187_s4 }
 0x3de   :  { %1049 = vtanh.f32 %v195_v59 }
 0x3e4   :  { %v1050_v60 = vpop.eup %1049 }
 0x3e5   :  { %198 = vrot.lane.b32.xlu0 %v1050_v60, %s1187_s4 }
 0x437   :  { %v250_v61 = vpop.permute.xlu2 %249 }
 0x438   :  { %v252_v62 = vmul.f32 %v250_v61, %v231_v44 }
 0x43a   :  { %v309_v63 = vrot.slane %v252_v62, 2  ;;  %254 = vrot.lane.b32.xlu2 %v252_v62, %s1188_s19 }
 0x43c   :  { %310 = vrot.lane.b32.xlu1 %v309_v63, %s1188_s19 }
 0x457   :  { %v199_v0 = vpop.permute.xlu0 %198 }
 0x458   :  { %v1329_v1 = vmul.f32 %v199_v0, %v183_v49 }
 0x45a   :  { %v258_v3 = vrot.slane %v1329_v1, 6 }
 0x45c   :  { %259 = vrot.lane.b32.xlu0 %v258_v3, %s1189_s5 }
 0x494   :  { %v255_v6 = vpop.permute.xlu2 %254 }
 0x4ae   :  { %v311_v5 = vpop.permute.xlu1 %310 }
 0x4af   :  { %1007 = vmatmul.msk.f32.vlgmr.msrb.gmra.mxu3 %vm105_vm1, %v311_v5 }
 0x4b0   :  { %711 = vmatpush.msrb.mxu3 %v1279_v24 }
 0x4b2   :  { %712 = vmatpush.msrb.mxu3 %v1281_v25 }
 0x4b4   :  { %713 = vmatpush.msrb.mxu3 %v1285_v26 }
 0x4b6   :  { %714 = vmatpush.msrb.mxu3 %v1292_v29 }
 0x4ce   :  { %v260_v7 = vpop.permute.xlu0 %259 }
 0x4cf   :  { %v262_v9 = vsel %vm105_vm1, %v255_v6, %v260_v7 }
 0x4d0   :  { %v264_v10 = vrot.slane %v262_v9, 2 }
 0x4d2   :  { %1006 = vmatmul.msk.f32.vlgmr.msrb.gmra.mxu1 %vm75_vm0, %v264_v10 }
 0x4d3   :  { %650 = vmatpush.msrb.mxu1 %v1240_v2 }
 0x4d5   :  { %651 = vmatpush.msrb.mxu1 %v1246_v4 }
 0x532   :  { %v331_v12 = vpop.f32.mrf.mxu3 }
 0x533   :  { %v335_v13 = vrot.slane %v331_v12, 4 }
 0x535   :  { %v337_v14 = vadd.f32 %v335_v13, %v1270_v11 }
 0x537   :  { %1051 = vtanh.f32 %v337_v14  ;;  %v338_v19 = vmul.f32 0.5, %v337_v14 }
 0x53d   :  { %v1052_v15 = vpop.eup %1051 }
 0x53e   :  { %348 = vrot.lane.b32.xlu2 %v1052_v15, %s1186_s18 }
 0x54f   :  { %v284_v16 = vpop.f32.mrf.mxu1 }
 0x550   :  { %v285_v17 = vadd.f32 %v1317_v35, %v284_v16 }
 0x552   :  { %1053 = vtanh.f32 %v285_v17  ;;  %v287_v28 = vmul.f32 0.5, %v285_v17 }
 0x553   :  { %1055 = vtanh.f32 %v338_v19 }
 0x554   :  { %1057 = vtanh.f32 %v287_v28 }
 0x558   :  { %v1054_v18 = vpop.eup %1053 }
 0x559   :  { %294 = vrot.lane.b32.xlu1 %v1054_v18, %s1186_s18  ;;  %v1056_v20 = vpop.eup %1055 }
 0x55a   :  { %v340_v21 = vmul.f32 0.5, %v1056_v20  ;;  %v1058_v30 = vpop.eup %1057 }
 0x55b   :  { %v289_v31 = vmul.f32 0.5, %v1058_v30 }
 0x55c   :  { %v341_v22 = vadd.f32 0.5, %v340_v21 }
 0x55d   :  { %v290_v32 = vadd.f32 0.5, %v289_v31 }
 0x55e   :  { %v346_v37 = vmul.f32 %v344_v36, %v341_v22 }
 0x55f   :  { %v292_v41 = vmul.f32 %v290_v32, %v195_v59 }
 0x598   :  { %v349_v23 = vpop.permute.xlu2 %348 }
 0x599   :  { %v351_v27 = vmul.f32 %v349_v23, %v341_v22 }
 0x59b   :  { %353 = vrot.lane.b32.xlu1 %v351_v27, %s1187_s4 }
 0x5cb   :  { %v295_v33 = vpop.permute.xlu1 %294 }
 0x5cc   :  { %v297_v34 = vmul.f32 %v295_v33, %v290_v32 }
 0x5ce   :  { %299 = vrot.lane.b32.xlu0 %v297_v34, %s1187_s4 }
 0x60d   :  { %v354_v38 = vpop.permute.xlu1 %353 }
 0x60e   :  { %v356_v39 = vadd.f32 %v354_v38, %v346_v37 }
 0x610   :  { %1059 = vtanh.f32 %v356_v39  ;;  %v454_v13 = vrot.slane %v356_v39, 6 }
 0x616   :  { %v1060_v40 = vpop.eup %1059 }
 0x617   :  { %359 = vrot.lane.b32.xlu0 %v1060_v40, %s1187_s4 }
 0x640   :  { %v300_v42 = vpop.permute.xlu0 %299 }
 0x641   :  { %v302_v43 = vadd.f32 %v300_v42, %v292_v41 }
 0x643   :  { %1061 = vtanh.f32 %v302_v43 }
 0x649   :  { %v1062_v44 = vpop.eup %1061 }
 0x64a   :  { %305 = vrot.lane.b32.xlu2 %v1062_v44, %s1187_s4 }
 0x689   :  { %v360_v45 = vpop.permute.xlu0 %359 }
 0x68a   :  { %v362_v46 = vmul.f32 %v360_v45, %v341_v22 }
 0x68c   :  { %v419_v47 = vrot.slane %v362_v46, 4  ;;  %364 = vrot.lane.b32.xlu1 %v362_v46, %s1188_s19 }
 0x68e   :  { %420 = vrot.lane.b32.xlu0 %v419_v47, %s1188_s19 }
 0x6a4   :  { %v306_v48 = vpop.permute.xlu2 %305 }
 0x6a5   :  { %v1352_v49 = vmul.f32 %v306_v48, %v290_v32  ;;  %v66_v32 = vld [vmem:[%s1474_s0 + $0x8] sm:$0xff]  ;;  %s1190_s0 = smov 32  }
 0x6a6   :  { %1003 = vmatmul.msk.f32.gmra.mxu0 %vm75_vm0, %v66_v32 }
 0x6a7   :  { %v368_v50 = vrot.slane %v1352_v49, 4 }
 0x6a9   :  { %369 = vrot.lane.b32.xlu2 %v368_v50, %s1189_s5 }
 0x6fe   :  { %v365_v52 = vpop.permute.xlu1 %364 }
 0x700   :  { %v421_v51 = vpop.permute.xlu0 %420 }
 0x701   :  { %1009 = vmatmul.msk.f32.vlgmr.msra.gmra.mxu1 %vm105_vm1, %v421_v51 }
 0x702   :  { %870 = vmatpush.msra.mxu1 %v1240_v2 }
 0x703   :  { %v370_v53 = vpop.permute.xlu2 %369 }
 0x704   :  { %v372_v54 = vsel %vm105_vm1, %v365_v52, %v370_v53  ;;  %871 = vmatpush.msra.mxu1 %v1246_v4 }
 0x705   :  { %v374_v55 = vrot.slane %v372_v54, 4 }
 0x707   :  { %1008 = vmatmul.msk.f32.vlgmr.msrb.gmra.mxu2 %vm75_vm0, %v374_v55 }
 0x708   :  { %821 = vmatpush.msrb.mxu2 %v1279_v24 }
 0x70a   :  { %822 = vmatpush.msrb.mxu2 %v1281_v25 }
 0x70c   :  { %823 = vmatpush.msrb.mxu2 %v1285_v26 }
 0x70e   :  { %824 = vmatpush.msrb.mxu2 %v1292_v29 }
 0x723   :  { %v102_v39 = vpop.f32.mrf.mxu0 }
 0x724   :  { %v1391_v40 = vadd.f32 %v1267_v8, %v102_v39 }
 0x77e   :  { %v441_v56 = vpop.f32.mrf.mxu1 }
 0x77f   :  { %v445_v57 = vrot.slane %v441_v56, 2 }
 0x781   :  { %v447_v2 = vadd.f32 %v445_v57, %v1270_v11 }
 0x783   :  { %1063 = vtanh.f32 %v447_v2  ;;  %v448_v61 = vmul.f32 0.5, %v447_v2 }
 0x789   :  { %v1064_v58 = vpop.eup %1063 }
 0x78a   :  { %458 = vrot.lane.b32.xlu2 %v1064_v58, %s1186_s18  ;;  %v394_v4 = vpop.f32.mrf.mxu2 }
 0x78b   :  { %v395_v59 = vadd.f32 %v1317_v35, %v394_v4 }
 0x78d   :  { %1065 = vtanh.f32 %v395_v59  ;;  %v397_v11 = vmul.f32 0.5, %v395_v59 }
 0x78e   :  { %1067 = vtanh.f32 %v448_v61 }
 0x78f   :  { %1069 = vtanh.f32 %v397_v11 }
 0x793   :  { %v1066_v60 = vpop.eup %1065 }
 0x794   :  { %404 = vrot.lane.b32.xlu1 %v1066_v60, %s1186_s18  ;;  %v1068_v62 = vpop.eup %1067 }
 0x795   :  { %v450_v63 = vmul.f32 0.5, %v1068_v62  ;;  %v1070_v6 = vpop.eup %1069 }
 0x796   :  { %v399_v7 = vmul.f32 0.5, %v1070_v6 }
 0x797   :  { %v451_v0 = vadd.f32 0.5, %v450_v63 }
 0x798   :  { %v400_v9 = vadd.f32 0.5, %v399_v7 }
 0x799   :  { %v456_v14 = vmul.f32 %v454_v13, %v451_v0 }
 0x79a   :  { %v402_v18 = vmul.f32 %v400_v9, %v302_v43 }
 0x7e4   :  { %v459_v3 = vpop.permute.xlu2 %458 }
 0x7e5   :  { %v461_v5 = vmul.f32 %v459_v3, %v451_v0 }
 0x7e7   :  { %463 = vrot.lane.b32.xlu1 %v461_v5, %s1187_s4 }
 0x806   :  { %v405_v10 = vpop.permute.xlu1 %404 }
 0x807   :  { %v407_v12 = vmul.f32 %v405_v10, %v400_v9 }
 0x809   :  { %409 = vrot.lane.b32.xlu0 %v407_v12, %s1187_s4 }
 0x859   :  { %v464_v15 = vpop.permute.xlu1 %463 }
 0x85a   :  { %v466_v16 = vadd.f32 %v464_v15, %v456_v14 }
 0x85c   :  { %1071 = vtanh.f32 %v466_v16  ;;  %v561_v55 = vrot.slane %v466_v16, 6 }
 0x862   :  { %v1072_v17 = vpop.eup %1071 }
 0x863   :  { %469 = vrot.lane.b32.xlu0 %v1072_v17, %s1187_s4 }
 0x87b   :  { %v410_v19 = vpop.permute.xlu0 %409 }
 0x87c   :  { %v412_v20 = vadd.f32 %v410_v19, %v402_v18 }
 0x87e   :  { %1073 = vtanh.f32 %v412_v20 }
 0x884   :  { %v1074_v21 = vpop.eup %1073 }
 0x885   :  { %415 = vrot.lane.b32.xlu2 %v1074_v21, %s1187_s4 }
 0x8d5   :  { %v470_v22 = vpop.permute.xlu0 %469 }
 0x8d6   :  { %v472_v23 = vmul.f32 %v470_v22, %v451_v0 }
 0x8d8   :  { %v529_v27 = vrot.slane %v472_v23, 6  ;;  %474 = vrot.lane.b32.xlu1 %v472_v23, %s1188_s19 }
 0x8da   :  { %530 = vrot.lane.b32.xlu0 %v529_v27, %s1188_s19 }
 0x8df   :  { %v416_v28 = vpop.permute.xlu2 %415 }
 0x8e0   :  { %v1375_v30 = vmul.f32 %v416_v28, %v400_v9 }
 0x8e2   :  { %v478_v31 = vrot.slane %v1375_v30, 2 }
 0x8e4   :  { %479 = vrot.lane.b32.xlu2 %v478_v31, %s1189_s5 }
 0x93e   :  { %v480_v33 = vpop.permute.xlu2 %479 }
 0x94a   :  { %v475_v34 = vpop.permute.xlu1 %474 }
 0x94b   :  { %v482_v36 = vsel %vm105_vm1, %v475_v34, %v480_v33 }
 0x94c   :  { %v484_v37 = vrot.slane %v482_v36, 6  ;;  %v531_v38 = vpop.permute.xlu0 %530 }
 0x94d   :  { %1011 = vmatmul.msk.f32.vlgmr.msrb.gmra.mxu0 %vm105_vm1, %v531_v38 }
 0x94e   :  { %1010 = vmatmul.msk.f32.vlgmr.msra.gmra.mxu3 %vm75_vm0, %v484_v37 }
 0x94f   :  { %931 = vmatpush.msra.mxu3 %v1279_v24 }
 0x951   :  { %932 = vmatpush.msra.mxu3 %v1281_v25 }
 0x953   :  { %933 = vmatpush.msra.mxu3 %v1285_v26 }
 0x955   :  { %934 = vmatpush.msra.mxu3 %v1292_v29 }
 0x9ca   :  { %v551_v41 = vpop.f32.mrf.mxu0 }
 0x9cb   :  { %v554_v42 = vadd.f32 %v551_v41, %v1391_v40 }
 0x9cd   :  { %1075 = vtanh.f32 %v554_v42  ;;  %v555_v25 = vmul.f32 0.5, %v554_v42 }
 0x9d1   :  { %v504_v43 = vpop.f32.mrf.mxu3 }
 0x9d2   :  { %v505_v44 = vadd.f32 %v1317_v35, %v504_v43 }
 0x9d3   :  { %v1076_v45 = vpop.eup %1075 }
 0x9d4   :  { %1077 = vtanh.f32 %v505_v44  ;;  %565 = vrot.lane.b32.xlu2 %v1076_v45, %s1186_s18  ;;  %v507_v48 = vmul.f32 0.5, %v505_v44 }
 0x9d5   :  { %1079 = vtanh.f32 %v555_v25 }
 0x9d6   :  { %1081 = vtanh.f32 %v507_v48 }
 0x9da   :  { %v1078_v24 = vpop.eup %1077 }
 0x9db   :  { %514 = vrot.lane.b32.xlu1 %v1078_v24, %s1186_s18  ;;  %v1080_v26 = vpop.eup %1079 }
 0x9dc   :  { %v557_v29 = vmul.f32 0.5, %v1080_v26  ;;  %v1082_v50 = vpop.eup %1081 }
 0x9dd   :  { %v509_v51 = vmul.f32 0.5, %v1082_v50 }
 0x9de   :  { %v558_v8 = vadd.f32 0.5, %v557_v29 }
 0x9df   :  { %v510_v52 = vadd.f32 0.5, %v509_v51 }
 0x9e0   :  { %v563_v56 = vmul.f32 %v561_v55, %v558_v8 }
 0x9e1   :  { %v512_v4 = vmul.f32 %v510_v52, %v412_v20 }
 0xa2e   :  { %v566_v46 = vpop.permute.xlu2 %565 }
 0xa2f   :  { %v568_v47 = vmul.f32 %v566_v46, %v558_v8 }
 0xa31   :  { %570 = vrot.lane.b32.xlu1 %v568_v47, %s1187_s4 }
 0xa4d   :  { %v515_v53 = vpop.permute.xlu1 %514 }
 0xa4e   :  { %v517_v54 = vmul.f32 %v515_v53, %v510_v52 }
 0xa50   :  { %519 = vrot.lane.b32.xlu0 %v517_v54, %s1187_s4 }
 0xaa3   :  { %v571_v57 = vpop.permute.xlu1 %570 }
 0xaa4   :  { %v573_v2 = vadd.f32 %v571_v57, %v563_v56 }
 0xaa6   :  { %1083 = vtanh.f32 %v573_v2  ;;  %v666_v38 = vrot.slane %v573_v2, 6 }
 0xaac   :  { %v1084_v58 = vpop.eup %1083 }
 0xaad   :  { %576 = vrot.lane.b32.xlu0 %v1084_v58, %s1187_s4 }
 0xac2   :  { %v520_v59 = vpop.permute.xlu0 %519 }
 0xac3   :  { %v522_v60 = vadd.f32 %v520_v59, %v512_v4 }
 0xac5   :  { %1085 = vtanh.f32 %v522_v60 }
 0xacb   :  { %v1086_v61 = vpop.eup %1085 }
 0xacc   :  { %525 = vrot.lane.b32.xlu2 %v1086_v61, %s1187_s4 }
 0xb1f   :  { %v577_v62 = vpop.permute.xlu0 %576 }
 0xb20   :  { %v579_v63 = vmul.f32 %v577_v62, %v558_v8 }
 0xb22   :  { %581 = vrot.lane.b32.xlu1 %v579_v63, %s1188_s19 }
 0xb26   :  { %v526_v0 = vpop.permute.xlu2 %525 }
 0xb27   :  { %v1402_v3 = vmul.f32 %v526_v0, %v510_v52 }
 0xb29   :  { %585 = vrot.lane.b32.xlu2 %v1402_v3, %s1189_s5 }
 0xb83   :  { %v586_v5 = vpop.permute.xlu2 %585 }
 0xb94   :  { %v582_v11 = vpop.permute.xlu1 %581 }
 0xb95   :  { %v588_v6 = vsel %vm105_vm1, %v582_v11, %v586_v5  ;;  %1013 = vmatmul.msk.f32.vlgmr.msrb.gmra.mxu1 %vm105_vm1, %v582_v11 }
 0xb96   :  { %1012 = vmatmul.msk.f32.vlgmr.msra.gmra.mxu2 %vm75_vm0, %v588_v6 }
 0xc12   :  { %v653_v7 = vpop.f32.mrf.mxu1 }
 0xc13   :  { %v657_v9 = vrot.slane %v653_v7, 6 }
 0xc15   :  { %v659_v10 = vadd.f32 %v657_v9, %v1391_v40 }
 0xc17   :  { %1087 = vtanh.f32 %v659_v10  ;;  %v660_v16 = vmul.f32 0.5, %v659_v10 }
 0xc19   :  { %v609_v12 = vpop.f32.mrf.mxu2 }
 0xc1a   :  { %v610_v13 = vadd.f32 %v1317_v35, %v609_v12 }
 0xc1c   :  { %1089 = vtanh.f32 %v610_v13  ;;  %v612_v17 = vmul.f32 0.5, %v610_v13 }
 0xc1d   :  { %v1088_v14 = vpop.eup %1087  ;;  %1091 = vtanh.f32 %v660_v16 }
 0xc1e   :  { %670 = vrot.lane.b32.xlu1 %v1088_v14, %s1186_s18  ;;  %1093 = vtanh.f32 %v612_v17 }
 0xc22   :  { %v1090_v15 = vpop.eup %1089 }
 0xc23   :  { %619 = vrot.lane.b32.xlu0 %v1090_v15, %s1186_s18  ;;  %v1092_v18 = vpop.eup %1091 }
 0xc24   :  { %v662_v19 = vmul.f32 0.5, %v1092_v18  ;;  %v1094_v20 = vpop.eup %1093 }
 0xc25   :  { %v614_v22 = vmul.f32 0.5, %v1094_v20 }
 0xc26   :  { %v663_v21 = vadd.f32 0.5, %v662_v19 }
 0xc27   :  { %v615_v28 = vadd.f32 0.5, %v614_v22 }
 0xc28   :  { %v668_v39 = vmul.f32 %v666_v38, %v663_v21 }
 0xc29   :  { %v617_v33 = vmul.f32 %v615_v28, %v522_v60 }
 0xc90   :  { %v671_v23 = vpop.permute.xlu1 %670 }
 0xc91   :  { %v673_v27 = vmul.f32 %v671_v23, %v663_v21 }
 0xc93   :  { %675 = vrot.lane.b32.xlu0 %v673_v27, %s1187_s4 }
 0xc95   :  { %v620_v31 = vpop.permute.xlu0 %619 }
 0xc96   :  { %v622_v32 = vmul.f32 %v620_v31, %v615_v28 }
 0xc98   :  { %624 = vrot.lane.b32.xlu2 %v622_v32, %s1187_s4 }
 0xcf2   :  { %v625_v34 = vpop.permute.xlu2 %624 }
 0xcf3   :  { %v627_v36 = vadd.f32 %v625_v34, %v617_v33 }
 0xcf5   :  { %1095 = vtanh.f32 %v627_v36 }
 0xcfb   :  { %v1096_v37 = vpop.eup %1095 }
 0xcfc   :  { %630 = vrot.lane.b32.xlu1 %v1096_v37, %s1187_s4 }
 0xd05   :  { %v676_v41 = vpop.permute.xlu0 %675 }
 0xd06   :  { %v678_v42 = vadd.f32 %v676_v41, %v668_v39 }
 0xd08   :  { %1097 = vtanh.f32 %v678_v42  ;;  %v776_v7 = vrot.slane %v678_v42, 6 }
 0xd0e   :  { %v1098_v43 = vpop.eup %1097 }
 0xd0f   :  { %681 = vrot.lane.b32.xlu2 %v1098_v43, %s1187_s4 }
 0xd69   :  { %v682_v44 = vpop.permute.xlu2 %681 }
 0xd6a   :  { %v684_v45 = vmul.f32 %v682_v44, %v663_v21 }
 0xd6c   :  { %v741_v24 = vrot.slane %v684_v45, 2  ;;  %686 = vrot.lane.b32.xlu0 %v684_v45, %s1188_s19 }
 0xd6e   :  { %742 = vrot.lane.b32.xlu2 %v741_v24, %s1188_s19  ;;  %v631_v25 = vpop.permute.xlu1 %630 }
 0xd6f   :  { %v1419_v26 = vmul.f32 %v631_v25, %v615_v28 }
 0xd71   :  { %v690_v29 = vrot.slane %v1419_v26, 6 }
 0xd73   :  { %691 = vrot.lane.b32.xlu1 %v690_v29, %s1189_s5 }
 0xdc8   :  { %v743_v8 = vpop.permute.xlu2 %742 }
 0xdc9   :  { %1015 = vmatmul.msk.f32.vlgmr.msra.gmra.mxu0 %vm105_vm1, %v743_v8 }
 0xdde   :  { %v687_v46 = vpop.permute.xlu0 %686 }
 0xde5   :  { %v692_v47 = vpop.permute.xlu1 %691 }
 0xde6   :  { %v694_v48 = vsel %vm105_vm1, %v687_v46, %v692_v47 }
 0xde7   :  { %v696_v50 = vrot.slane %v694_v48, 2 }
 0xde9   :  { %1014 = vmatmul.msk.f32.vlgmr.msrb.gmra.mxu3 %vm75_vm0, %v696_v50 }
 0xe46   :  { %v763_v51 = vpop.f32.mrf.mxu0 }
 0xe47   :  { %v767_v52 = vrot.slane %v763_v51, 4 }
 0xe49   :  { %v769_v53 = vadd.f32 %v767_v52, %v1391_v40 }
 0xe4b   :  { %1099 = vtanh.f32 %v769_v53  ;;  %v770_v2 = vmul.f32 0.5, %v769_v53 }
 0xe51   :  { %v1100_v54 = vpop.eup %1099 }
 0xe52   :  { %780 = vrot.lane.b32.xlu1 %v1100_v54, %s1186_s18 }
 0xe6c   :  { %v716_v55 = vpop.f32.mrf.mxu3 }
 0xe6d   :  { %v717_v56 = vadd.f32 %v1317_v35, %v716_v55 }
 0xe6f   :  { %1101 = vtanh.f32 %v717_v56  ;;  %v719_v62 = vmul.f32 0.5, %v717_v56 }
 0xe70   :  { %1103 = vtanh.f32 %v770_v2 }
 0xe71   :  { %1105 = vtanh.f32 %v719_v62 }
 0xe75   :  { %v1102_v57 = vpop.eup %1101 }
 0xe76   :  { %726 = vrot.lane.b32.xlu0 %v1102_v57, %s1186_s18  ;;  %v1104_v58 = vpop.eup %1103 }
 0xe77   :  { %v772_v4 = vmul.f32 0.5, %v1104_v58  ;;  %v1106_v63 = vpop.eup %1105 }
 0xe78   :  { %v721_v0 = vmul.f32 0.5, %v1106_v63 }
 0xe79   :  { %v773_v59 = vadd.f32 0.5, %v772_v4 }
 0xe7a   :  { %v722_v5 = vadd.f32 0.5, %v721_v0 }
 0xe7b   :  { %v778_v9 = vmul.f32 %v776_v7, %v773_v59 }
 0xe7c   :  { %v724_v14 = vmul.f32 %v722_v5, %v627_v36 }
 0xec4   :  { %v781_v60 = vpop.permute.xlu1 %780 }
 0xec5   :  { %v783_v61 = vmul.f32 %v781_v60, %v773_v59 }
 0xec7   :  { %785 = vrot.lane.b32.xlu0 %v783_v61, %s1187_s4 }
 0xee8   :  { %v727_v11 = vpop.permute.xlu0 %726 }
 0xee9   :  { %v729_v6 = vmul.f32 %v727_v11, %v722_v5 }
 0xeeb   :  { %731 = vrot.lane.b32.xlu2 %v729_v6, %s1187_s4 }
 0xf39   :  { %v786_v10 = vpop.permute.xlu0 %785 }
 0xf3a   :  { %v788_v12 = vadd.f32 %v786_v10, %v778_v9 }
 0xf3c   :  { %1107 = vtanh.f32 %v788_v12  ;;  %v886_v51 = vrot.slane %v788_v12, 6 }
 0xf42   :  { %v1108_v13 = vpop.eup %1107 }
 0xf43   :  { %791 = vrot.lane.b32.xlu2 %v1108_v13, %s1187_s4 }
 0xf45   :  { %v732_v15 = vpop.permute.xlu2 %731 }
 0xf46   :  { %v734_v16 = vadd.f32 %v732_v15, %v724_v14 }
 0xf48   :  { %1109 = vtanh.f32 %v734_v16 }
 0xf4e   :  { %v1110_v17 = vpop.eup %1109 }
 0xf4f   :  { %737 = vrot.lane.b32.xlu1 %v1110_v17, %s1187_s4 }
 0xf9d   :  { %v792_v18 = vpop.permute.xlu2 %791 }
 0xf9e   :  { %v794_v19 = vmul.f32 %v792_v18, %v773_v59 }
 0xfa0   :  { %v851_v20 = vrot.slane %v794_v19, 4  ;;  %796 = vrot.lane.b32.xlu0 %v794_v19, %s1188_s19 }
 0xfa2   :  { %852 = vrot.lane.b32.xlu2 %v851_v20, %s1188_s19 }
 0xfc1   :  { %v738_v21 = vpop.permute.xlu1 %737 }
 0xfc2   :  { %v1436_v22 = vmul.f32 %v738_v21, %v722_v5 }
 0xfc4   :  { %v800_v23 = vrot.slane %v1436_v22, 4 }
 0xfc6   :  { %801 = vrot.lane.b32.xlu1 %v800_v23, %s1189_s5 }
 0xffc   :  { %v853_v27 = vpop.permute.xlu2 %852 }
 0xffd   :  { %1017 = vmatmul.msk.f32.vlgmr.msra.gmra.mxu1 %vm105_vm1, %v853_v27 }
0x1012   :  { %v797_v28 = vpop.permute.xlu0 %796 }
0x1038   :  { %v802_v31 = vpop.permute.xlu1 %801 }
0x1039   :  { %v804_v32 = vsel %vm105_vm1, %v797_v28, %v802_v31 }
0x103a   :  { %v806_v33 = vrot.slane %v804_v32, 4 }
0x103c   :  { %1016 = vmatmul.msk.f32.vlgmr.msrb.gmra.mxu2 %vm75_vm0, %v806_v33 }
0x107a   :  { %v873_v34 = vpop.f32.mrf.mxu1 }
0x107b   :  { %v877_v36 = vrot.slane %v873_v34, 2 }
0x107d   :  { %v879_v37 = vadd.f32 %v877_v36, %v1391_v40 }
0x107f   :  { %1111 = vtanh.f32 %v879_v37  ;;  %v880_v43 = vmul.f32 0.5, %v879_v37 }
0x1085   :  { %v1112_v38 = vpop.eup %1111 }
0x1086   :  { %890 = vrot.lane.b32.xlu1 %v1112_v38, %s1186_s18 }
0x10bf   :  { %v826_v39 = vpop.f32.mrf.mxu2 }
0x10c0   :  { %v827_v41 = vadd.f32 %v1317_v35, %v826_v39 }
0x10c2   :  { %1113 = vtanh.f32 %v827_v41  ;;  %v829_v40 = vmul.f32 0.5, %v827_v41 }
0x10c3   :  { %1115 = vtanh.f32 %v880_v43 }
0x10c4   :  { %1117 = vtanh.f32 %v829_v40 }
0x10c8   :  { %v1114_v42 = vpop.eup %1113 }
0x10c9   :  { %836 = vrot.lane.b32.xlu0 %v1114_v42, %s1186_s18  ;;  %v1116_v44 = vpop.eup %1115 }
0x10ca   :  { %v882_v45 = vmul.f32 0.5, %v1116_v44  ;;  %v1118_v8 = vpop.eup %1117 }
0x10cb   :  { %v831_v46 = vmul.f32 0.5, %v1118_v8 }
0x10cc   :  { %v883_v24 = vadd.f32 0.5, %v882_v45 }
0x10cd   :  { %v832_v47 = vadd.f32 0.5, %v831_v46 }
0x10ce   :  { %v888_v52 = vmul.f32 %v886_v51, %v883_v24 }
0x10cf   :  { %v834_v56 = vmul.f32 %v832_v47, %v734_v16 }
0x10f8   :  { %v891_v25 = vpop.permute.xlu1 %890 }
0x10f9   :  { %v893_v29 = vmul.f32 %v891_v25, %v883_v24 }
0x10fb   :  { %895 = vrot.lane.b32.xlu0 %v893_v29, %s1187_s4 }
0x113b   :  { %v837_v48 = vpop.permute.xlu0 %836 }
0x113c   :  { %v839_v50 = vmul.f32 %v837_v48, %v832_v47 }
0x113e   :  { %841 = vrot.lane.b32.xlu2 %v839_v50, %s1187_s4 }
0x116d   :  { %v896_v53 = vpop.permute.xlu0 %895 }
0x116e   :  { %v898_v54 = vadd.f32 %v896_v53, %v888_v52 }
0x1170   :  { %1119 = vtanh.f32 %v898_v54 }
0x1176   :  { %v1120_v55 = vpop.eup %1119 }
0x1177   :  { %901 = vrot.lane.b32.xlu2 %v1120_v55, %s1187_s4 }
0x1198   :  { %v842_v57 = vpop.permute.xlu2 %841 }
0x1199   :  { %v844_v2 = vadd.f32 %v842_v57, %v834_v56 }
0x119b   :  { %1121 = vtanh.f32 %v844_v2 }
0x11a1   :  { %v1122_v58 = vpop.eup %1121 }
0x11a2   :  { %847 = vrot.lane.b32.xlu1 %v1122_v58, %s1187_s4 }
0x11d1   :  { %v902_v4 = vpop.permute.xlu2 %901 }
0x11d2   :  { %v904_v59 = vmul.f32 %v902_v4, %v883_v24 }
0x11d4   :  { %906 = vrot.lane.b32.xlu0 %v904_v59, %s1188_s19 }
0x1214   :  { %v848_v60 = vpop.permute.xlu1 %847 }
0x1215   :  { %v850_v61 = vmul.f32 %v848_v60, %v832_v47 }
0x1217   :  { %v910_v62 = vrot.slane %v850_v61, 2 }
0x1219   :  { %911 = vrot.lane.b32.xlu1 %v910_v62, %s1189_s5 }
0x1246   :  { %v907_v63 = vpop.permute.xlu0 %906 }
0x128b   :  { %v912_v0 = vpop.permute.xlu1 %911 }
0x128c   :  { %v914_v5 = vsel %vm105_vm1, %v907_v63, %v912_v0 }
0x128d   :  { %v916_v11 = vrot.slane %v914_v5, 6 }
0x128f   :  { %1018 = vmatmul.msk.f32.vlgmr.msra.gmra.mxu3 %vm75_vm0, %v916_v11 }
0x1312   :  { %v936_v6 = vpop.f32.mrf.mxu3 }
0x1313   :  { %v937_v7 = vadd.f32 %v1317_v35, %v936_v6 }
0x1315   :  { %1123 = vtanh.f32 %v937_v7  ;;  %v939_v10 = vmul.f32 0.5, %v937_v7 }
0x1317   :  { %1125 = vtanh.f32 %v939_v10 }
0x131b   :  { %v1124_v9 = vpop.eup %1123 }
0x131c   :  { %946 = vrot.lane.b32.xlu2 %v1124_v9, %s1186_s18 }
0x131d   :  { %v1126_v12 = vpop.eup %1125 }
0x131e   :  { %v941_v13 = vmul.f32 0.5, %v1126_v12 }
0x1320   :  { %v942_v14 = vadd.f32 0.5, %v941_v13 }
0x1322   :  { %v944_v35 = vmul.f32 %v942_v14, %v844_v2 }
0x1324   :  { %961 = vrot.lane.b32.xlu2 %v1329_v1, %s1188_s19 }
0x132c   :  { %970 = vrot.lane.b32.xlu2 %v1419_v26, %s1190_s0 }
0x1376   :  { %v947_v15 = vpop.permute.xlu2 %946 }
0x1377   :  { %v949_v16 = vmul.f32 %v947_v15, %v942_v14 }
0x1379   :  { %951 = vrot.lane.b32.xlu0 %v949_v16, %s1187_s4 }
0x1381   :  { %964 = vrot.lane.b32.xlu0 %v1352_v49, %s1189_s5  ;;  %v962_v49 = vpop.permute.xlu2 %961 }
0x1389   :  { %973 = vrot.lane.b32.xlu0 %v1436_v22, %s1191_s24  ;;  %v971_v23 = vpop.permute.xlu2 %970 }
0x13eb   :  { %v952_v1 = vpop.permute.xlu0 %951 }
0x13ec   :  { %v954_v17 = vadd.f32 %v952_v1, %v944_v35 }
0x13ee   :  { %1127 = vtanh.f32 %v954_v17 }
0x13f3   :  { %v965_v20 = vpop.permute.xlu0 %964 }
0x13f4   :  { %v1128_v26 = vpop.eup %1127  ;;  %v983_v22 = vsel %vm105_vm1, %v962_v49, %v965_v20 }
0x13f5   :  { %957 = vrot.lane.b32.xlu1 %v1128_v26, %s1187_s4  ;;  %v984_v27 = vsel %vm75_vm0, %v983_v22, %v1375_v30 }
0x13fb   :  { %v974_v32 = vpop.permute.xlu0 %973 }
0x13fd   :  { %967 = vrot.lane.b32.xlu1 %v1402_v3, %s1187_s4 }
0x1405   :  { %976 = vrot.lane.b32.xlu1 %v850_v61, %s1192_s25 }
0x1467   :  { %v958_v18 = vpop.permute.xlu1 %957 }
0x1468   :  { %v960_v19 = vmul.f32 %v958_v18, %v942_v14 }
0x146a   :  { %980 = vrot.lane.b32.xlu2 %v960_v19, %s1186_s18 }
0x146f   :  { %v968_v21 = vpop.permute.xlu1 %967 }
0x1470   :  { %v986_v28 = vsel %vm985_vm2, %v984_v27, %v968_v21 }
0x1471   :  { %v988_v31 = vsel %vm987_vm3, %v986_v28, %v971_v23 }
0x1472   :  { %v990_v33 = vsel %vm989_vm4, %v988_v31, %v974_v32 }
0x1477   :  { %v977_v3 = vpop.permute.xlu1 %976 }
0x1478   :  { %v992_v34 = vsel %vm991_vm5, %v990_v33, %v977_v3 }
0x14c4   :  { %v981_v36 = vpop.permute.xlu2 %980 }
0x14c5   :  { %v994_v37 = vsel %vm993_vm6, %v992_v34, %v981_v36 }
0x14c6   :  { %995 = vst [vmem:[%s1480_s6] sm:$0x3] %v994_v37 }
0x14c7   :  { %1000 = vsyncpa [#allocation3], 1 }
0x14c8   :  { %1001 = vsyncpa [#allocation5], 1 }

</bundles_post_ra>
